<compile_context>
chip_gen: v5e
topology: v5e:2x2
jax: 0.10.0
libtpu: 0.0.40
codegen_flags: <defaults>
</compile_context>

<pallas_src>
import functools
import math

import jax
import jax.numpy as jnp
from jax.experimental import pallas as pl
from jax.experimental.pallas import tpu as pltpu

LOG_2PI = math.log(2.0 * math.pi)


# ----------------------------------------------------------------------------
# Fused kernel: z/u encoders + grouper + (time, cap_dim) roll + Bernoulli decoder
# ----------------------------------------------------------------------------
def _fused_pctvae_kernel(
    x_ref, eps_z_ref, eps_u_ref, wenc_ref, benc_ref, wg_ref, wd_ref, bd_ref,
    lat_ref, probs_ref, nll_ref,
    *, S, n_t, delta_t,
):
    x_bf = x_ref[...]                                 # (rows, D) bf16 (MXU operand)

    # ---- fused z/u encoders: one bf16 MXU pass, f32 accumulate.
    # Columns: [mu_z | mu_u | lv_z | lv_u]
    enc = jnp.dot(x_bf, wenc_ref[...], preferred_element_type=jnp.float32) + benc_ref[...]
    mu_z = enc[:, 0 * S:1 * S]
    mu_u = enc[:, 1 * S:2 * S]
    lv_z = enc[:, 2 * S:3 * S]
    lv_u = enc[:, 3 * S:4 * S]

    eps_z = eps_z_ref[...]                            # f32
    eps_u = eps_u_ref[...]                            # f32

    z = mu_z + eps_z * jnp.exp(0.5 * lv_z)
    u = mu_u + eps_u * jnp.exp(0.5 * lv_u)
    # elementwise KL = log q(.|x) - log p(.)  (the 0.5*log(2*pi) terms cancel)
    kl_z = 0.5 * (z * z - eps_z * eps_z - lv_z)
    kl_u = 0.5 * (u * u - eps_u * eps_u - lv_u)

    # ---- grouper: chi-squared normalization over capsule membership
    u2 = (u * u).astype(wg_ref.dtype)                 # bf16 MXU operand (nonneg, 0/1 weights)
    v = jnp.dot(u2, wg_ref[...], preferred_element_type=jnp.float32)
    s = z * jax.lax.rsqrt(v + 1e-6)

    # lane-dense latent slab: [z | u | s | kl_z | kl_u]; direct slice stores
    # (no jnp.concatenate temp / extra lane shifts).
    lat_ref[:, 0 * S:1 * S] = z
    lat_ref[:, 1 * S:2 * S] = u
    lat_ref[:, 2 * S:3 * S] = s
    lat_ref[:, 3 * S:4 * S] = kl_z
    lat_ref[:, 4 * S:5 * S] = kl_u

    # ---- PCTVAE time roll: roll rows by delta_t within each group of n_t rows.
    # (The cap_dim roll was folded into wd by the wrapper; rows_blk is always a
    #  whole number of n_t-row time groups -- enforced by the block picker.)
    if delta_t == 0:
        s_dec = s
    else:
        rows = s.shape[0]
        rolled_a = pltpu.roll(s, shift=delta_t, axis=0)                  # s[r - dt]
        rolled_b = pltpu.roll(s, shift=(delta_t - n_t) % rows, axis=0)   # s[r - dt + n_t]
        row_in_group = jax.lax.broadcasted_iota(jnp.int32, s.shape, 0) % n_t
        s_dec = jnp.where(row_in_group >= delta_t, rolled_a, rolled_b)

    # ---- Bernoulli decoder from logits (stable; one exp per element)
    logits = jnp.dot(s_dec.astype(wd_ref.dtype), wd_ref[...],
                     preferred_element_type=jnp.float32) + bd_ref[...]
    e = jnp.exp(-jnp.abs(logits))                     # in (0, 1]
    r = pl.reciprocal(1.0 + e, approx=True)           # EUP path (free slot)
    probs = jnp.where(logits >= 0.0, r, e * r)
    xf = x_bf.astype(jnp.float32)
    # -log Bernoulli(probs).log_prob(x) = max(l,0) - l*x + log1p(exp(-|l|))
    nll = jnp.maximum(logits, 0.0) - logits * xf + jnp.log1p(e)

    probs_ref[...] = probs.astype(probs_ref.dtype)
    nll_ref[...] = nll.astype(nll_ref.dtype)


# ----------------------------------------------------------------------------
# Host-side parameter fusion / permutation folding
# ----------------------------------------------------------------------------
def prepare_params(params, *, n_caps, cap_dim, delta_t):
    """Concatenate encoder weights, fold the static cap_dim roll into wd,
    and cast the MXU-side weights to bf16 (biases stay f32)."""
    w_enc = jnp.concatenate(
        [params["wz_mu"], params["wu_mu"], params["wz_lv"], params["wu_lv"]],
        axis=1).astype(jnp.bfloat16)
    b_enc = jnp.concatenate(
        [params["bz_mu"], params["bu_mu"], params["bz_lv"], params["bu_lv"]],
        axis=1).astype(jnp.float32)
    wd = params["wd"]
    S, D = wd.shape
    # s_rolled @ wd == s @ wd_eff with wd_eff rows rolled by -delta_t within
    # each capsule's cap_dim block.
    wd_eff = jnp.roll(wd.reshape(n_caps, cap_dim, D), shift=-delta_t,
                      axis=1).reshape(S, D).astype(jnp.bfloat16)
    return {
        "w_enc": w_enc,
        "b_enc": b_enc,
        "wg": params["wg"].astype(jnp.bfloat16),   # 0/1 membership: exact in bf16
        "wd_eff": wd_eff,
        "bd": params["bd"].astype(jnp.float32),
    }


# ----------------------------------------------------------------------------
# Per-generation VMEM budget + block picking
# ----------------------------------------------------------------------------
def _vmem_capacity_bytes():
    """Physical per-core VMEM; conservative (v7x-sized) fallback if unknown."""
    try:
        info = pltpu.get_tpu_info()
        cap = getattr(info, "vmem_capacity_bytes", None)
        if cap:
            return int(cap)
    except Exception:
        pass
    return 64 * 2**20


def _block_vmem_bytes(rows, D, S, weight_bufs=2):
    """Tight model: double-buffered row tiles + resident weights + slack."""
    in_tiles = rows * D * 2 + 2 * rows * S * 4            # x bf16, eps_z/eps_u f32
    out_tiles = rows * 5 * S * 4 + 2 * rows * D * 2       # lat f32, probs/nll bf16
    tiles = 2 * (in_tiles + out_tiles)                    # double-buffered pipeline
    weights = weight_bufs * (D * 4 * S * 2 + 4 * S * 4 + S * S * 2 + S * D * 2 + D * 4)
    return int(1.25 * (tiles + weights)) + (2 << 20)      # 25% slack + compiler scratch


def _pick_block_batches(bsz, n_t, D, S, budget, target_rows):
    """rows per block = bb * n_t: whole time groups, multiple of 8 (or all rows),
    fits the VMEM budget, prefers >=2 grid steps (megacore / pipelining)."""
    N = bsz * n_t
    feasible = []
    for bb in range(1, bsz + 1):
        if bsz % bb:
            continue
        rows = bb * n_t
        if rows % 8 != 0 and rows != N:
            continue
        if _block_vmem_bytes(rows, D, S) > budget:
            continue
        feasible.append(bb)
    if not feasible:
        feasible = [bsz]
    multi = [bb for bb in feasible if bsz // bb >= 2]      # >=2 grid steps if possible
    pool = multi if multi else feasible
    under = [bb for bb in pool if bb * n_t <= target_rows]
    return max(under) if under else min(pool)


# ----------------------------------------------------------------------------
# PCTVAE forward wrapper
# ----------------------------------------------------------------------------
def pctvae_forward(x, eps_z, eps_u, params, *, bsz, n_t, n_caps, cap_dim,
                   train_delta_t, delta_t=None, target_block_rows=None,
                   image_out_dtype=jnp.bfloat16):
    if delta_t is None:
        delta_t = train_delta_t
    N = bsz * n_t
    S = n_caps * cap_dim
    C, H, W = x.shape[1:]
    D = C * H * W
    assert x.shape[0] == N

    # bf16 x halves the dominant HBM read; NLL math upcasts in-kernel.
    x_bf = x.reshape(N, D).astype(jnp.bfloat16)
    eps_z_f = eps_z.astype(jnp.float32)
    eps_u_f = eps_u.astype(jnp.float32)

    fp = prepare_params(params, n_caps=n_caps, cap_dim=cap_dim, delta_t=delta_t)

    # Per-generation VMEM budget: 0.75 * physical (48 MiB on v7x, 96 MiB on v5e/v6e).
    vmem_cap = _vmem_capacity_bytes()
    vmem_budget = (3 * vmem_cap) // 4
    if target_block_rows is None:
        target_block_rows = 256 if vmem_budget <= (48 << 20) else 512

    bb = _pick_block_batches(bsz, n_t, D, S, vmem_budget, target_block_rows)
    rows_blk = bb * n_t
    assert N % rows_blk == 0 and rows_blk % n_t == 0   # whole time-groups per block
    grid = (N // rows_blk,)

    kernel = functools.partial(_fused_pctvae_kernel, S=S, n_t=n_t,
                               delta_t=delta_t % n_t)

    out_shapes = (
        jax.ShapeDtypeStruct((N, 5 * S), jnp.float32),       # [z|u|s|kl_z|kl_u]
        jax.ShapeDtypeStruct((N, D), image_out_dtype),        # probs
        jax.ShapeDtypeStruct((N, D), image_out_dtype),        # nll
    )
    # TODO(synk): if downstream only needs the summed reconstruction loss, the
    # nll map could be reduced over D in-kernel to cut HBM writes ~in half; the
    # module contract returns the per-element map, so it is kept.

    def _run(weight_bufs):
        wkw = {} if weight_bufs is None else {"pipeline_mode": pl.Buffered(weight_bufs)}
        return pl.pallas_call(
            kernel,
            out_shape=out_shapes,
            grid_spec=pltpu.PrefetchScalarGridSpec(
                num_scalar_prefetch=0,
                grid=grid,
                in_specs=[
                    pl.BlockSpec((rows_blk, D), lambda i: (i, 0)),        # x (bf16)
                    pl.BlockSpec((rows_blk, S), lambda i: (i, 0)),        # eps_z
                    pl.BlockSpec((rows_blk, S), lambda i: (i, 0)),        # eps_u
                    pl.BlockSpec((D, 4 * S), lambda i: (0, 0), **wkw),    # w_enc (resident)
                    pl.BlockSpec((1, 4 * S), lambda i: (0, 0), **wkw),    # b_enc
                    pl.BlockSpec((S, S), lambda i: (0, 0), **wkw),        # wg
                    pl.BlockSpec((S, D), lambda i: (0, 0), **wkw),        # wd (cap roll folded)
                    pl.BlockSpec((1, D), lambda i: (0, 0), **wkw),        # bd
                ],
                out_specs=[
                    pl.BlockSpec((rows_blk, 5 * S), lambda i: (i, 0)),    # latent slab
                    pl.BlockSpec((rows_blk, D), lambda i: (i, 0)),        # probs
                    pl.BlockSpec((rows_blk, D), lambda i: (i, 0)),        # nll
                ],
            ),
            compiler_params=pltpu.CompilerParams(
                dimension_semantics=("parallel",),
                vmem_limit_bytes=int(vmem_budget),
            ),
        )(x_bf, eps_z_f, eps_u_f, fp["w_enc"], fp["b_enc"], fp["wg"],
          fp["wd_eff"], fp["bd"])

    try:
        # Constant-index weight specs don't need double buffers.
        lat, probs_flat, nll_flat = _run(1)
    except Exception:
        # Fallback: default (double) buffering if Buffered(1) is rejected here.
        lat, probs_flat, nll_flat = _run(None)

    z = lat[:, 0 * S:1 * S].reshape(N, S, 1, 1)
    u = lat[:, 1 * S:2 * S].reshape(N, S, 1, 1)
    s = lat[:, 2 * S:3 * S].reshape(N, S, 1, 1)
    kl_z = lat[:, 3 * S:4 * S].reshape(N, S, 1, 1)
    kl_u = lat[:, 4 * S:5 * S].reshape(N, S, 1, 1)
    probs_x = probs_flat.reshape(N, C, H, W)
    neg_logpx_z = nll_flat.reshape(N, C, H, W)
    return z, u, s, probs_x, kl_z, kl_u, neg_logpx_z


# ----------------------------------------------------------------------------
# Deterministic synthetic parameters (no checkpoint loading)
# ----------------------------------------------------------------------------
def make_params(key, D, S, n_caps, cap_dim):
    ks = jax.random.split(key, 6)
    scale = 1.0 / math.sqrt(D)
    f32 = jnp.float32
    return {
        "wz_mu": jax.random.normal(ks[0], (D, S), f32) * scale,
        "wz_lv": jax.random.normal(ks[1], (D, S), f32) * scale,
        "bz_mu": jnp.zeros((1, S), f32),
        "bz_lv": jnp.zeros((1, S), f32),
        "wu_mu": jax.random.normal(ks[2], (D, S), f32) * scale,
        "wu_lv": jax.random.normal(ks[3], (D, S), f32) * scale,
        "bu_mu": jnp.zeros((1, S), f32),
        "bu_lv": jnp.zeros((1, S), f32),
        # grouper: block-diagonal capsule-membership matrix (sum of u^2 per capsule)
        # TODO(synk): the injected TVAE grouper may also pool over neighboring
        # time steps; here the pooling window is restricted to within each capsule.
        "wg": jnp.kron(jnp.eye(n_caps, dtype=f32), jnp.ones((cap_dim, cap_dim), f32)),
        "wd": jax.random.normal(ks[4], (S, D), f32) * (1.0 / math.sqrt(S)),
        "bd": jnp.zeros((1, D), f32),
    }


# ----------------------------------------------------------------------------
# Pure-JAX reference (mirrors the PyTorch forward) for correctness checking
# ----------------------------------------------------------------------------
def _reference_forward(x, eps_z, eps_u, params, *, bsz, n_t, n_caps, cap_dim, delta_t):
    N = x.shape[0]
    C, H, W = x.shape[1:]
    D = C * H * W
    S = n_caps * cap_dim
    hi = jax.lax.Precision.HIGHEST
    xf = x.reshape(N, D)

    def encode(w_mu, w_lv, b_mu, b_lv, eps):
        mu = jnp.dot(xf, w_mu, precision=hi) + b_mu
        lv = jnp.dot(xf, w_lv, precision=hi) + b_lv
        val = mu + eps * jnp.exp(0.5 * lv)
        log_q = -0.5 * eps * eps - 0.5 * lv - 0.5 * LOG_2PI
        log_p = -0.5 * val * val - 0.5 * LOG_2PI
        return val, log_q - log_p

    z, kl_z = encode(params["wz_mu"], params["wz_lv"], params["bz_mu"], params["bz_lv"], eps_z)
    u, kl_u = encode(params["wu_mu"], params["wu_lv"], params["bu_mu"], params["bu_lv"], eps_u)
    v = jnp.dot(u * u, params["wg"], precision=hi)
    s = z * jax.lax.rsqrt(v + 1e-6)

    s_caps = s.reshape(bsz, n_t, n_caps, cap_dim)
    s_rolled = jnp.roll(s_caps, shift=(delta_t, delta_t), axis=(1, 3)).reshape(N, S)

    logits = jnp.dot(s_rolled, params["wd"], precision=hi) + params["bd"]
    probs = jax.nn.sigmoid(logits)
    nll = jnp.maximum(logits, 0.0) - logits * xf + jnp.log1p(jnp.exp(-jnp.abs(logits)))

    rs = lambda a: a.reshape(N, S, 1, 1)
    return (rs(z), rs(u), rs(s), probs.reshape(N, C, H, W),
            rs(kl_z), rs(kl_u), nll.reshape(N, C, H, W))


if __name__ == "__main__":
    # Small shapes consistent with the module's constructor arguments.
    bsz, n_t = 8, 4              # N = bsz * n_t = 32 -> 2 grid steps of 16 rows
    n_caps, cap_dim = 4, 8       # S = 32  (4*S = 128 -> one full lane tile)
    C, H, W = 1, 8, 8            # D = 64
    train_delta_t = 1

    N = bsz * n_t
    S = n_caps * cap_dim
    D = C * H * W

    key = jax.random.PRNGKey(0)
    k_x, k_p, k_ez, k_eu = jax.random.split(key, 4)

    x = jax.random.uniform(k_x, (N, C, H, W), jnp.float32)      # Bernoulli-ish data
    params = make_params(k_p, D, S, n_caps, cap_dim)
    eps_z = jax.random.normal(k_ez, (N, S), jnp.float32)        # reparam noise
    eps_u = jax.random.normal(k_eu, (N, S), jnp.float32)

    outs = pctvae_forward(
        x, eps_z, eps_u, params,
        bsz=bsz, n_t=n_t, n_caps=n_caps, cap_dim=cap_dim,
        train_delta_t=train_delta_t,
    )
    outs = jax.block_until_ready(outs)
    z, u, s, probs_x, kl_z, kl_u, neg_logpx_z = outs

    assert z.shape == (N, S, 1, 1) and u.shape == (N, S, 1, 1) and s.shape == (N, S, 1, 1)
    assert kl_z.shape == (N, S, 1, 1) and kl_u.shape == (N, S, 1, 1)
    assert probs_x.shape == (N, C, H, W) and neg_logpx_z.shape == (N, C, H, W)

    ref = _reference_forward(x, eps_z, eps_u, params, bsz=bsz, n_t=n_t,
                             n_caps=n_caps, cap_dim=cap_dim, delta_t=train_delta_t)
    names = ("z", "u", "s", "probs_x", "kl_z", "kl_u", "neg_logpx_z")
    # Tolerance reflects bf16 MXU operands + bf16 probs/nll outputs (per perf review).
    for name, got, want in zip(names, outs, ref):
        got32 = jnp.asarray(got, jnp.float32)
        assert bool(jnp.all(jnp.isfinite(got32))), f"non-finite {name}"
        assert bool(jnp.allclose(got32, want, rtol=2e-2, atol=2e-2)), f"mismatch in {name}"

    print("KERNEL_OK")
</pallas_src>

<mosaic_0001>
module attributes {stable_mosaic.version = 11 : i64} {
  func.func @_fused_pctvae_kernel(%arg0: i32, %arg1: memref<16x64xbf16, #tpu.memory_space<vmem>>, %arg2: memref<16x32xf32, #tpu.memory_space<vmem>>, %arg3: memref<16x32xf32, #tpu.memory_space<vmem>>, %arg4: memref<64x128xbf16, #tpu.memory_space<vmem>>, %arg5: memref<1x128xf32, #tpu.memory_space<vmem>>, %arg6: memref<32x32xbf16, #tpu.memory_space<vmem>>, %arg7: memref<32x64xbf16, #tpu.memory_space<vmem>>, %arg8: memref<1x64xf32, #tpu.memory_space<vmem>>, %arg9: memref<16x160xf32, #tpu.memory_space<vmem>>, %arg10: memref<16x64xbf16, #tpu.memory_space<vmem>>, %arg11: memref<16x64xbf16, #tpu.memory_space<vmem>>) attributes {dimension_semantics = [#tpu.dimension_semantics<parallel>], iteration_bounds = array<i64: 2>, scalar_prefetch = 0 : i64, scratch_operands = 0 : i64, tpu.core_type = #tpu.core_type<tc>, window_params = [{transform_indices = @transform_0, window_bounds = array<i64: 16, 64>}, {transform_indices = @transform_1, window_bounds = array<i64: 16, 32>}, {transform_indices = @transform_2, window_bounds = array<i64: 16, 32>}, {pipeline_mode = #tpu.pipeline_mode<synchronous>, transform_indices = @transform_3, window_bounds = array<i64: 64, 128>}, {pipeline_mode = #tpu.pipeline_mode<synchronous>, transform_indices = @transform_4, window_bounds = array<i64: 1, 128>}, {pipeline_mode = #tpu.pipeline_mode<synchronous>, transform_indices = @transform_5, window_bounds = array<i64: 32, 32>}, {pipeline_mode = #tpu.pipeline_mode<synchronous>, transform_indices = @transform_6, window_bounds = array<i64: 32, 64>}, {pipeline_mode = #tpu.pipeline_mode<synchronous>, transform_indices = @transform_7, window_bounds = array<i64: 1, 64>}, {transform_indices = @transform_8, window_bounds = array<i64: 16, 160>}, {transform_indices = @transform_9, window_bounds = array<i64: 16, 64>}, {transform_indices = @transform_10, window_bounds = array<i64: 16, 64>}]} {
    %c0 = arith.constant 0 : index
    %c0_0 = arith.constant 0 : index
    %0 = vector.load %arg1[%c0, %c0_0] : memref<16x64xbf16, #tpu.memory_space<vmem>>, vector<16x64xbf16>
    %c0_1 = arith.constant 0 : index
    %c0_2 = arith.constant 0 : index
    %1 = vector.load %arg4[%c0_1, %c0_2] : memref<64x128xbf16, #tpu.memory_space<vmem>>, vector<64x128xbf16>
    %cst = arith.constant dense<0.000000e+00> : vector<16x128xf32>
    %2 = tpu.matmul %0, %1, %cst {dimension_numbers = #tpu.dot_dimension_numbers<[1], [0], [0], [1], [0, 0, 1, 1], [], []>} : vector<16x64xbf16>, vector<64x128xbf16>, vector<16x128xf32> -> vector<16x128xf32>
    %c0_3 = arith.constant 0 : index
    %c0_4 = arith.constant 0 : index
    %3 = vector.load %arg5[%c0_3, %c0_4] : memref<1x128xf32, #tpu.memory_space<vmem>>, vector<1x128xf32>
    %4 = vector.broadcast %3 : vector<1x128xf32> to vector<16x128xf32>
    %5 = arith.addf %2, %4 : vector<16x128xf32>
    %6 = vector.extract_strided_slice %5 {offsets = [0, 0], sizes = [16, 32], strides = [1, 1]} : vector<16x128xf32> to vector<16x32xf32>
    %7 = vector.extract_strided_slice %5 {offsets = [0, 32], sizes = [16, 32], strides = [1, 1]} : vector<16x128xf32> to vector<16x32xf32>
    %8 = vector.extract_strided_slice %5 {offsets = [0, 64], sizes = [16, 32], strides = [1, 1]} : vector<16x128xf32> to vector<16x32xf32>
    %9 = vector.extract_strided_slice %5 {offsets = [0, 96], sizes = [16, 32], strides = [1, 1]} : vector<16x128xf32> to vector<16x32xf32>
    %c0_5 = arith.constant 0 : index
    %c0_6 = arith.constant 0 : index
    %10 = vector.load %arg2[%c0_5, %c0_6] : memref<16x32xf32, #tpu.memory_space<vmem>>, vector<16x32xf32>
    %c0_7 = arith.constant 0 : index
    %c0_8 = arith.constant 0 : index
    %11 = vector.load %arg3[%c0_7, %c0_8] : memref<16x32xf32, #tpu.memory_space<vmem>>, vector<16x32xf32>
    %cst_9 = arith.constant 5.000000e-01 : f32
    %12 = vector.broadcast %cst_9 : f32 to vector<16x32xf32>
    %13 = arith.mulf %12, %8 : vector<16x32xf32>
    %14 = math.exp %13 : vector<16x32xf32>
    %15 = arith.mulf %10, %14 : vector<16x32xf32>
    %16 = arith.addf %6, %15 : vector<16x32xf32>
    %cst_10 = arith.constant 5.000000e-01 : f32
    %17 = vector.broadcast %cst_10 : f32 to vector<16x32xf32>
    %18 = arith.mulf %17, %9 : vector<16x32xf32>
    %19 = math.exp %18 : vector<16x32xf32>
    %20 = arith.mulf %11, %19 : vector<16x32xf32>
    %21 = arith.addf %7, %20 : vector<16x32xf32>
    %22 = arith.mulf %16, %16 : vector<16x32xf32>
    %23 = arith.mulf %10, %10 : vector<16x32xf32>
    %24 = arith.subf %22, %23 : vector<16x32xf32>
    %25 = arith.subf %24, %8 : vector<16x32xf32>
    %cst_11 = arith.constant 5.000000e-01 : f32
    %26 = vector.broadcast %cst_11 : f32 to vector<16x32xf32>
    %27 = arith.mulf %26, %25 : vector<16x32xf32>
    %28 = arith.mulf %21, %21 : vector<16x32xf32>
    %29 = arith.mulf %11, %11 : vector<16x32xf32>
    %30 = arith.subf %28, %29 : vector<16x32xf32>
    %31 = arith.subf %30, %9 : vector<16x32xf32>
    %cst_12 = arith.constant 5.000000e-01 : f32
    %32 = vector.broadcast %cst_12 : f32 to vector<16x32xf32>
    %33 = arith.mulf %32, %31 : vector<16x32xf32>
    %34 = arith.mulf %21, %21 : vector<16x32xf32>
    %35 = arith.truncf %34 : vector<16x32xf32> to vector<16x32xbf16>
    %c0_13 = arith.constant 0 : index
    %c0_14 = arith.constant 0 : index
    %36 = vector.load %arg6[%c0_13, %c0_14] : memref<32x32xbf16, #tpu.memory_space<vmem>>, vector<32x32xbf16>
    %cst_15 = arith.constant dense<0.000000e+00> : vector<16x32xf32>
    %37 = tpu.matmul %35, %36, %cst_15 {dimension_numbers = #tpu.dot_dimension_numbers<[1], [0], [0], [1], [0, 0, 1, 1], [], []>} : vector<16x32xbf16>, vector<32x32xbf16>, vector<16x32xf32> -> vector<16x32xf32>
    %cst_16 = arith.constant 9.99999997E-7 : f32
    %38 = vector.broadcast %cst_16 : f32 to vector<16x32xf32>
    %39 = arith.addf %37, %38 : vector<16x32xf32>
    %40 = math.rsqrt %39 : vector<16x32xf32>
    %41 = arith.mulf %16, %40 : vector<16x32xf32>
    %c0_17 = arith.constant 0 : index
    %c0_18 = arith.constant 0 : index
    %42 = vector.load %arg9[%c0_17, %c0_18] : memref<16x160xf32, #tpu.memory_space<vmem>>, vector<16x32xf32>
    tpu.vector_store %arg9[%c0_17, %c0_18], %16 {strides = array<i32>} : memref<16x160xf32, #tpu.memory_space<vmem>>, vector<16x32xf32>,
    %c0_19 = arith.constant 0 : index
    %c32 = arith.constant 32 : index
    %43 = vector.load %arg9[%c0_19, %c32] : memref<16x160xf32, #tpu.memory_space<vmem>>, vector<16x32xf32>
    tpu.vector_store %arg9[%c0_19, %c32], %21 {strides = array<i32>} : memref<16x160xf32, #tpu.memory_space<vmem>>, vector<16x32xf32>,
    %c0_20 = arith.constant 0 : index
    %c64 = arith.constant 64 : index
    %44 = vector.load %arg9[%c0_20, %c64] : memref<16x160xf32, #tpu.memory_space<vmem>>, vector<16x32xf32>
    tpu.vector_store %arg9[%c0_20, %c64], %41 {strides = array<i32>} : memref<16x160xf32, #tpu.memory_space<vmem>>, vector<16x32xf32>,
    %c0_21 = arith.constant 0 : index
    %c96 = arith.constant 96 : index
    %45 = vector.load %arg9[%c0_21, %c96] : memref<16x160xf32, #tpu.memory_space<vmem>>, vector<16x32xf32>
    tpu.vector_store %arg9[%c0_21, %c96], %27 {strides = array<i32>} : memref<16x160xf32, #tpu.memory_space<vmem>>, vector<16x32xf32>,
    %c0_22 = arith.constant 0 : index
    %c128 = arith.constant 128 : index
    %46 = vector.load %arg9[%c0_22, %c128] : memref<16x160xf32, #tpu.memory_space<vmem>>, vector<16x32xf32>
    tpu.vector_store %arg9[%c0_22, %c128], %33 {strides = array<i32>} : memref<16x160xf32, #tpu.memory_space<vmem>>, vector<16x32xf32>,
    %c1_i32 = arith.constant 1 : i32
    %47 = tpu.dynamic_rotate %41 by %c1_i32 dim 0 : vector<16x32xf32>, i32 -> vector<16x32xf32>
    %c13_i32 = arith.constant 13 : i32
    %48 = tpu.dynamic_rotate %41 by %c13_i32 dim 0 : vector<16x32xf32>, i32 -> vector<16x32xf32>
    %49 = tpu.iota {dimensions = array<i32: 0>} : vector<16x32xi32>
    %c4_i32 = arith.constant 4 : i32
    %c0_i32 = arith.constant 0 : i32
    %50 = arith.cmpi eq, %c4_i32, %c0_i32 : i32
    %c1_i32_23 = arith.constant 1 : i32
    %51 = arith.select %50, %c1_i32_23, %c4_i32 : i32
    %52 = vector.broadcast %51 : i32 to vector<16x32xi32>
    %53 = arith.remsi %49, %52 : vector<16x32xi32>
    %c0_i32_24 = arith.constant 0 : i32
    %54 = vector.broadcast %c0_i32_24 : i32 to vector<16x32xi32>
    %55 = arith.cmpi ne, %53, %54 : vector<16x32xi32>
    %c0_i32_25 = arith.constant 0 : i32
    %56 = vector.broadcast %c0_i32_25 : i32 to vector<16x32xi32>
    %57 = arith.cmpi slt, %53, %56 : vector<16x32xi32>
    %c0_i32_26 = arith.constant 0 : i32
    %58 = arith.cmpi slt, %51, %c0_i32_26 : i32
    %59 = vector.broadcast %58 : i1 to vector<16x32xi1>
    %60 = vector.broadcast %59 : vector<16x32xi1> to vector<16x32xi1>
    %61 = arith.xori %57, %60 : vector<16x32xi1>
    %62 = arith.andi %61, %55 : vector<16x32xi1>
    %63 = vector.broadcast %51 : i32 to vector<16x32xi32>
    %64 = arith.addi %53, %63 : vector<16x32xi32>
    %65 = arith.select %62, %64, %53 : vector<16x32xi1>, vector<16x32xi32>
    %c1_i32_27 = arith.constant 1 : i32
    %66 = vector.broadcast %c1_i32_27 : i32 to vector<16x32xi32>
    %67 = arith.cmpi sge, %65, %66 : vector<16x32xi32>
    %68 = arith.select %67, %47, %48 : vector<16x32xi1>, vector<16x32xf32>
    %69 = arith.truncf %68 : vector<16x32xf32> to vector<16x32xbf16>
    %c0_28 = arith.constant 0 : index
    %c0_29 = arith.constant 0 : index
    %70 = vector.load %arg7[%c0_28, %c0_29] : memref<32x64xbf16, #tpu.memory_space<vmem>>, vector<32x64xbf16>
    %cst_30 = arith.constant dense<0.000000e+00> : vector<16x64xf32>
    %71 = tpu.matmul %69, %70, %cst_30 {dimension_numbers = #tpu.dot_dimension_numbers<[1], [0], [0], [1], [0, 0, 1, 1], [], []>} : vector<16x32xbf16>, vector<32x64xbf16>, vector<16x64xf32> -> vector<16x64xf32>
    %c0_31 = arith.constant 0 : index
    %c0_32 = arith.constant 0 : index
    %72 = vector.load %arg8[%c0_31, %c0_32] : memref<1x64xf32, #tpu.memory_space<vmem>>, vector<1x64xf32>
    %73 = vector.broadcast %72 : vector<1x64xf32> to vector<16x64xf32>
    %74 = arith.addf %71, %73 : vector<16x64xf32>
    %75 = math.absf %74 : vector<16x64xf32>
    %cst_33 = arith.constant 0.000000e+00 : f32
    %76 = vector.broadcast %cst_33 : f32 to vector<16x64xf32>
    %77 = arith.subf %76, %75 : vector<16x64xf32>
    %78 = math.exp %77 : vector<16x64xf32>
    %cst_34 = arith.constant 1.000000e+00 : f32
    %79 = vector.broadcast %cst_34 : f32 to vector<16x64xf32>
    %80 = arith.addf %79, %78 : vector<16x64xf32>
    %81 = tpu.reciprocal %80 {approx = true} : vector<16x64xf32> -> vector<16x64xf32>
    %cst_35 = arith.constant 0.000000e+00 : f32
    %82 = vector.broadcast %cst_35 : f32 to vector<16x64xf32>
    %83 = arith.cmpf oge, %74, %82 : vector<16x64xf32>
    %84 = arith.mulf %78, %81 : vector<16x64xf32>
    %85 = arith.select %83, %81, %84 : vector<16x64xi1>, vector<16x64xf32>
    %86 = arith.extf %0 : vector<16x64xbf16> to vector<16x64xf32>
    %cst_36 = arith.constant 0.000000e+00 : f32
    %87 = vector.broadcast %cst_36 : f32 to vector<16x64xf32>
    %88 = arith.maximumf %74, %87 : vector<16x64xf32>
    %89 = arith.mulf %74, %86 : vector<16x64xf32>
    %90 = arith.subf %88, %89 : vector<16x64xf32>
    %91 = math.log1p %78 : vector<16x64xf32>
    %92 = arith.addf %90, %91 : vector<16x64xf32>
    %93 = arith.truncf %85 : vector<16x64xf32> to vector<16x64xbf16>
    %c0_37 = arith.constant 0 : index
    %c0_38 = arith.constant 0 : index
    %94 = vector.load %arg10[%c0_37, %c0_38] : memref<16x64xbf16, #tpu.memory_space<vmem>>, vector<16x64xbf16>
    tpu.vector_store %arg10[%c0_37, %c0_38], %93 {strides = array<i32>} : memref<16x64xbf16, #tpu.memory_space<vmem>>, vector<16x64xbf16>,
    %95 = arith.truncf %92 : vector<16x64xf32> to vector<16x64xbf16>
    %c0_39 = arith.constant 0 : index
    %c0_40 = arith.constant 0 : index
    %96 = vector.load %arg11[%c0_39, %c0_40] : memref<16x64xbf16, #tpu.memory_space<vmem>>, vector<16x64xbf16>
    tpu.vector_store %arg11[%c0_39, %c0_40], %95 {strides = array<i32>} : memref<16x64xbf16, #tpu.memory_space<vmem>>, vector<16x64xbf16>,
    return
  }
  func.func @transform_0(%arg0: i32) -> (i32, i32) {
    %c0_i32 = arith.constant 0 : i32
    %c0_i32_0 = arith.constant 0 : i32
    return %arg0, %c0_i32 : i32, i32
  }
  func.func @transform_1(%arg0: i32) -> (i32, i32) {
    %c0_i32 = arith.constant 0 : i32
    %c0_i32_0 = arith.constant 0 : i32
    return %arg0, %c0_i32 : i32, i32
  }
  func.func @transform_2(%arg0: i32) -> (i32, i32) {
    %c0_i32 = arith.constant 0 : i32
    %c0_i32_0 = arith.constant 0 : i32
    return %arg0, %c0_i32 : i32, i32
  }
  func.func @transform_3(%arg0: i32) -> (i32, i32) {
    %c0_i32 = arith.constant 0 : i32
    %c0_i32_0 = arith.constant 0 : i32
    %c0_i32_1 = arith.constant 0 : i32
    return %c0_i32, %c0_i32_0 : i32, i32
  }
  func.func @transform_4(%arg0: i32) -> (i32, i32) {
    %c0_i32 = arith.constant 0 : i32
    %c0_i32_0 = arith.constant 0 : i32
    %c0_i32_1 = arith.constant 0 : i32
    return %c0_i32, %c0_i32_0 : i32, i32
  }
  func.func @transform_5(%arg0: i32) -> (i32, i32) {
    %c0_i32 = arith.constant 0 : i32
    %c0_i32_0 = arith.constant 0 : i32
    %c0_i32_1 = arith.constant 0 : i32
    return %c0_i32, %c0_i32_0 : i32, i32
  }
  func.func @transform_6(%arg0: i32) -> (i32, i32) {
    %c0_i32 = arith.constant 0 : i32
    %c0_i32_0 = arith.constant 0 : i32
    %c0_i32_1 = arith.constant 0 : i32
    return %c0_i32, %c0_i32_0 : i32, i32
  }
  func.func @transform_7(%arg0: i32) -> (i32, i32) {
    %c0_i32 = arith.constant 0 : i32
    %c0_i32_0 = arith.constant 0 : i32
    %c0_i32_1 = arith.constant 0 : i32
    return %c0_i32, %c0_i32_0 : i32, i32
  }
  func.func @transform_8(%arg0: i32) -> (i32, i32) {
    %c0_i32 = arith.constant 0 : i32
    %c0_i32_0 = arith.constant 0 : i32
    return %arg0, %c0_i32 : i32, i32
  }
  func.func @transform_9(%arg0: i32) -> (i32, i32) {
    %c0_i32 = arith.constant 0 : i32
    %c0_i32_0 = arith.constant 0 : i32
    return %arg0, %c0_i32 : i32, i32
  }
  func.func @transform_10(%arg0: i32) -> (i32, i32) {
    %c0_i32 = arith.constant 0 : i32
    %c0_i32_0 = arith.constant 0 : i32
    return %arg0, %c0_i32 : i32, i32
  }
}

module attributes {stable_mosaic.version = 11 : i64} {
  func.func @_fused_pctvae_kernel(%arg0: i32, %arg1: memref<16x64xbf16, #tpu.memory_space<vmem>>, %arg2: memref<16x32xf32, #tpu.memory_space<vmem>>, %arg3: memref<16x32xf32, #tpu.memory_space<vmem>>, %arg4: memref<64x128xbf16, #tpu.memory_space<vmem>>, %arg5: memref<1x128xf32, #tpu.memory_space<vmem>>, %arg6: memref<32x32xbf16, #tpu.memory_space<vmem>>, %arg7: memref<32x64xbf16, #tpu.memory_space<vmem>>, %arg8: memref<1x64xf32, #tpu.memory_space<vmem>>, %arg9: memref<16x160xf32, #tpu.memory_space<vmem>>, %arg10: memref<16x64xbf16, #tpu.memory_space<vmem>>, %arg11: memref<16x64xbf16, #tpu.memory_space<vmem>>) attributes {dimension_semantics = [#tpu.dimension_semantics<parallel>], iteration_bounds = array<i64: 2>, scalar_prefetch = 0 : i64, scratch_operands = 0 : i64, tpu.core_type = #tpu.core_type<tc>, window_params = [{transform_indices = @transform_0, window_bounds = array<i64: 16, 64>}, {transform_indices = @transform_1, window_bounds = array<i64: 16, 32>}, {transform_indices = @transform_2, window_bounds = array<i64: 16, 32>}, {pipeline_mode = #tpu.pipeline_mode<synchronous>, transform_indices = @transform_3, window_bounds = array<i64: 64, 128>}, {pipeline_mode = #tpu.pipeline_mode<synchronous>, transform_indices = @transform_4, window_bounds = array<i64: 1, 128>}, {pipeline_mode = #tpu.pipeline_mode<synchronous>, transform_indices = @transform_5, window_bounds = array<i64: 32, 32>}, {pipeline_mode = #tpu.pipeline_mode<synchronous>, transform_indices = @transform_6, window_bounds = array<i64: 32, 64>}, {pipeline_mode = #tpu.pipeline_mode<synchronous>, transform_indices = @transform_7, window_bounds = array<i64: 1, 64>}, {transform_indices = @transform_8, window_bounds = array<i64: 16, 160>}, {transform_indices = @transform_9, window_bounds = array<i64: 16, 64>}, {transform_indices = @transform_10, window_bounds = array<i64: 16, 64>}]} {
    %c0 = arith.constant 0 : index
    %c0_0 = arith.constant 0 : index
    %0 = vector.load %arg1[%c0, %c0_0] : memref<16x64xbf16, #tpu.memory_space<vmem>>, vector<16x64xbf16>
    %c0_1 = arith.constant 0 : index
    %c0_2 = arith.constant 0 : index
    %1 = vector.load %arg4[%c0_1, %c0_2] : memref<64x128xbf16, #tpu.memory_space<vmem>>, vector<64x128xbf16>
    %cst = arith.constant dense<0.000000e+00> : vector<16x128xf32>
    %2 = tpu.matmul %0, %1, %cst {dimension_numbers = #tpu.dot_dimension_numbers<[1], [0], [0], [1], [0, 0, 1, 1], [], []>} : vector<16x64xbf16>, vector<64x128xbf16>, vector<16x128xf32> -> vector<16x128xf32>
    %c0_3 = arith.constant 0 : index
    %c0_4 = arith.constant 0 : index
    %3 = vector.load %arg5[%c0_3, %c0_4] : memref<1x128xf32, #tpu.memory_space<vmem>>, vector<1x128xf32>
    %4 = vector.broadcast %3 : vector<1x128xf32> to vector<16x128xf32>
    %5 = arith.addf %2, %4 : vector<16x128xf32>
    %6 = vector.extract_strided_slice %5 {offsets = [0, 0], sizes = [16, 32], strides = [1, 1]} : vector<16x128xf32> to vector<16x32xf32>
    %7 = vector.extract_strided_slice %5 {offsets = [0, 32], sizes = [16, 32], strides = [1, 1]} : vector<16x128xf32> to vector<16x32xf32>
    %8 = vector.extract_strided_slice %5 {offsets = [0, 64], sizes = [16, 32], strides = [1, 1]} : vector<16x128xf32> to vector<16x32xf32>
    %9 = vector.extract_strided_slice %5 {offsets = [0, 96], sizes = [16, 32], strides = [1, 1]} : vector<16x128xf32> to vector<16x32xf32>
    %c0_5 = arith.constant 0 : index
    %c0_6 = arith.constant 0 : index
    %10 = vector.load %arg2[%c0_5, %c0_6] : memref<16x32xf32, #tpu.memory_space<vmem>>, vector<16x32xf32>
    %c0_7 = arith.constant 0 : index
    %c0_8 = arith.constant 0 : index
    %11 = vector.load %arg3[%c0_7, %c0_8] : memref<16x32xf32, #tpu.memory_space<vmem>>, vector<16x32xf32>
    %cst_9 = arith.constant 5.000000e-01 : f32
    %12 = vector.broadcast %cst_9 : f32 to vector<16x32xf32>
    %13 = arith.mulf %12, %8 : vector<16x32xf32>
    %14 = math.exp %13 : vector<16x32xf32>
    %15 = arith.mulf %10, %14 : vector<16x32xf32>
    %16 = arith.addf %6, %15 : vector<16x32xf32>
    %cst_10 = arith.constant 5.000000e-01 : f32
    %17 = vector.broadcast %cst_10 : f32 to vector<16x32xf32>
    %18 = arith.mulf %17, %9 : vector<16x32xf32>
    %19 = math.exp %18 : vector<16x32xf32>
    %20 = arith.mulf %11, %19 : vector<16x32xf32>
    %21 = arith.addf %7, %20 : vector<16x32xf32>
    %22 = arith.mulf %16, %16 : vector<16x32xf32>
    %23 = arith.mulf %10, %10 : vector<16x32xf32>
    %24 = arith.subf %22, %23 : vector<16x32xf32>
    %25 = arith.subf %24, %8 : vector<16x32xf32>
    %cst_11 = arith.constant 5.000000e-01 : f32
    %26 = vector.broadcast %cst_11 : f32 to vector<16x32xf32>
    %27 = arith.mulf %26, %25 : vector<16x32xf32>
    %28 = arith.mulf %21, %21 : vector<16x32xf32>
    %29 = arith.mulf %11, %11 : vector<16x32xf32>
    %30 = arith.subf %28, %29 : vector<16x32xf32>
    %31 = arith.subf %30, %9 : vector<16x32xf32>
    %cst_12 = arith.constant 5.000000e-01 : f32
    %32 = vector.broadcast %cst_12 : f32 to vector<16x32xf32>
    %33 = arith.mulf %32, %31 : vector<16x32xf32>
    %34 = arith.mulf %21, %21 : vector<16x32xf32>
    %35 = arith.truncf %34 : vector<16x32xf32> to vector<16x32xbf16>
    %c0_13 = arith.constant 0 : index
    %c0_14 = arith.constant 0 : index
    %36 = vector.load %arg6[%c0_13, %c0_14] : memref<32x32xbf16, #tpu.memory_space<vmem>>, vector<32x32xbf16>
    %cst_15 = arith.constant dense<0.000000e+00> : vector<16x32xf32>
    %37 = tpu.matmul %35, %36, %cst_15 {dimension_numbers = #tpu.dot_dimension_numbers<[1], [0], [0], [1], [0, 0, 1, 1], [], []>} : vector<16x32xbf16>, vector<32x32xbf16>, vector<16x32xf32> -> vector<16x32xf32>
    %cst_16 = arith.constant 9.99999997E-7 : f32
    %38 = vector.broadcast %cst_16 : f32 to vector<16x32xf32>
    %39 = arith.addf %37, %38 : vector<16x32xf32>
    %40 = math.rsqrt %39 : vector<16x32xf32>
    %41 = arith.mulf %16, %40 : vector<16x32xf32>
    %c0_17 = arith.constant 0 : index
    %c0_18 = arith.constant 0 : index
    %42 = vector.load %arg9[%c0_17, %c0_18] : memref<16x160xf32, #tpu.memory_space<vmem>>, vector<16x32xf32>
    tpu.vector_store %arg9[%c0_17, %c0_18], %16 {strides = array<i32>} : memref<16x160xf32, #tpu.memory_space<vmem>>, vector<16x32xf32>,
    %c0_19 = arith.constant 0 : index
    %c32 = arith.constant 32 : index
    %43 = vector.load %arg9[%c0_19, %c32] : memref<16x160xf32, #tpu.memory_space<vmem>>, vector<16x32xf32>
    tpu.vector_store %arg9[%c0_19, %c32], %21 {strides = array<i32>} : memref<16x160xf32, #tpu.memory_space<vmem>>, vector<16x32xf32>,
    %c0_20 = arith.constant 0 : index
    %c64 = arith.constant 64 : index
    %44 = vector.load %arg9[%c0_20, %c64] : memref<16x160xf32, #tpu.memory_space<vmem>>, vector<16x32xf32>
    tpu.vector_store %arg9[%c0_20, %c64], %41 {strides = array<i32>} : memref<16x160xf32, #tpu.memory_space<vmem>>, vector<16x32xf32>,
    %c0_21 = arith.constant 0 : index
    %c96 = arith.constant 96 : index
    %45 = vector.load %arg9[%c0_21, %c96] : memref<16x160xf32, #tpu.memory_space<vmem>>, vector<16x32xf32>
    tpu.vector_store %arg9[%c0_21, %c96], %27 {strides = array<i32>} : memref<16x160xf32, #tpu.memory_space<vmem>>, vector<16x32xf32>,
    %c0_22 = arith.constant 0 : index
    %c128 = arith.constant 128 : index
    %46 = vector.load %arg9[%c0_22, %c128] : memref<16x160xf32, #tpu.memory_space<vmem>>, vector<16x32xf32>
    tpu.vector_store %arg9[%c0_22, %c128], %33 {strides = array<i32>} : memref<16x160xf32, #tpu.memory_space<vmem>>, vector<16x32xf32>,
    %c1_i32 = arith.constant 1 : i32
    %47 = tpu.dynamic_rotate %41 by %c1_i32 dim 0 : vector<16x32xf32>, i32 -> vector<16x32xf32>
    %c13_i32 = arith.constant 13 : i32
    %48 = tpu.dynamic_rotate %41 by %c13_i32 dim 0 : vector<16x32xf32>, i32 -> vector<16x32xf32>
    %49 = tpu.iota {dimensions = array<i32: 0>} : vector<16x32xi32>
    %c4_i32 = arith.constant 4 : i32
    %c0_i32 = arith.constant 0 : i32
    %50 = arith.cmpi eq, %c4_i32, %c0_i32 : i32
    %c1_i32_23 = arith.constant 1 : i32
    %51 = arith.select %50, %c1_i32_23, %c4_i32 : i32
    %52 = vector.broadcast %51 : i32 to vector<16x32xi32>
    %53 = arith.remsi %49, %52 : vector<16x32xi32>
    %c0_i32_24 = arith.constant 0 : i32
    %54 = vector.broadcast %c0_i32_24 : i32 to vector<16x32xi32>
    %55 = arith.cmpi ne, %53, %54 : vector<16x32xi32>
    %c0_i32_25 = arith.constant 0 : i32
    %56 = vector.broadcast %c0_i32_25 : i32 to vector<16x32xi32>
    %57 = arith.cmpi slt, %53, %56 : vector<16x32xi32>
    %c0_i32_26 = arith.constant 0 : i32
    %58 = arith.cmpi slt, %51, %c0_i32_26 : i32
    %59 = vector.broadcast %58 : i1 to vector<16x32xi1>
    %60 = vector.broadcast %59 : vector<16x32xi1> to vector<16x32xi1>
    %61 = arith.xori %57, %60 : vector<16x32xi1>
    %62 = arith.andi %61, %55 : vector<16x32xi1>
    %63 = vector.broadcast %51 : i32 to vector<16x32xi32>
    %64 = arith.addi %53, %63 : vector<16x32xi32>
    %65 = arith.select %62, %64, %53 : vector<16x32xi1>, vector<16x32xi32>
    %c1_i32_27 = arith.constant 1 : i32
    %66 = vector.broadcast %c1_i32_27 : i32 to vector<16x32xi32>
    %67 = arith.cmpi sge, %65, %66 : vector<16x32xi32>
    %68 = arith.select %67, %47, %48 : vector<16x32xi1>, vector<16x32xf32>
    %69 = arith.truncf %68 : vector<16x32xf32> to vector<16x32xbf16>
    %c0_28 = arith.constant 0 : index
    %c0_29 = arith.constant 0 : index
    %70 = vector.load %arg7[%c0_28, %c0_29] : memref<32x64xbf16, #tpu.memory_space<vmem>>, vector<32x64xbf16>
    %cst_30 = arith.constant dense<0.000000e+00> : vector<16x64xf32>
    %71 = tpu.matmul %69, %70, %cst_30 {dimension_numbers = #tpu.dot_dimension_numbers<[1], [0], [0], [1], [0, 0, 1, 1], [], []>} : vector<16x32xbf16>, vector<32x64xbf16>, vector<16x64xf32> -> vector<16x64xf32>
    %c0_31 = arith.constant 0 : index
    %c0_32 = arith.constant 0 : index
    %72 = vector.load %arg8[%c0_31, %c0_32] : memref<1x64xf32, #tpu.memory_space<vmem>>, vector<1x64xf32>
    %73 = vector.broadcast %72 : vector<1x64xf32> to vector<16x64xf32>
    %74 = arith.addf %71, %73 : vector<16x64xf32>
    %75 = math.absf %74 : vector<16x64xf32>
    %cst_33 = arith.constant 0.000000e+00 : f32
    %76 = vector.broadcast %cst_33 : f32 to vector<16x64xf32>
    %77 = arith.subf %76, %75 : vector<16x64xf32>
    %78 = math.exp %77 : vector<16x64xf32>
    %cst_34 = arith.constant 1.000000e+00 : f32
    %79 = vector.broadcast %cst_34 : f32 to vector<16x64xf32>
    %80 = arith.addf %79, %78 : vector<16x64xf32>
    %81 = tpu.reciprocal %80 {approx = true} : vector<16x64xf32> -> vector<16x64xf32>
    %cst_35 = arith.constant 0.000000e+00 : f32
    %82 = vector.broadcast %cst_35 : f32 to vector<16x64xf32>
    %83 = arith.cmpf oge, %74, %82 : vector<16x64xf32>
    %84 = arith.mulf %78, %81 : vector<16x64xf32>
    %85 = arith.select %83, %81, %84 : vector<16x64xi1>, vector<16x64xf32>
    %86 = arith.extf %0 : vector<16x64xbf16> to vector<16x64xf32>
    %cst_36 = arith.constant 0.000000e+00 : f32
    %87 = vector.broadcast %cst_36 : f32 to vector<16x64xf32>
    %88 = arith.maximumf %74, %87 : vector<16x64xf32>
    %89 = arith.mulf %74, %86 : vector<16x64xf32>
    %90 = arith.subf %88, %89 : vector<16x64xf32>
    %91 = math.log1p %78 : vector<16x64xf32>
    %92 = arith.addf %90, %91 : vector<16x64xf32>
    %93 = arith.truncf %85 : vector<16x64xf32> to vector<16x64xbf16>
    %c0_37 = arith.constant 0 : index
    %c0_38 = arith.constant 0 : index
    %94 = vector.load %arg10[%c0_37, %c0_38] : memref<16x64xbf16, #tpu.memory_space<vmem>>, vector<16x64xbf16>
    tpu.vector_store %arg10[%c0_37, %c0_38], %93 {strides = array<i32>} : memref<16x64xbf16, #tpu.memory_space<vmem>>, vector<16x64xbf16>,
    %95 = arith.truncf %92 : vector<16x64xf32> to vector<16x64xbf16>
    %c0_39 = arith.constant 0 : index
    %c0_40 = arith.constant 0 : index
    %96 = vector.load %arg11[%c0_39, %c0_40] : memref<16x64xbf16, #tpu.memory_space<vmem>>, vector<16x64xbf16>
    tpu.vector_store %arg11[%c0_39, %c0_40], %95 {strides = array<i32>} : memref<16x64xbf16, #tpu.memory_space<vmem>>, vector<16x64xbf16>,
    return
  }
  func.func @transform_0(%arg0: i32) -> (i32, i32) {
    %c0_i32 = arith.constant 0 : i32
    %c0_i32_0 = arith.constant 0 : i32
    return %arg0, %c0_i32 : i32, i32
  }
  func.func @transform_1(%arg0: i32) -> (i32, i32) {
    %c0_i32 = arith.constant 0 : i32
    %c0_i32_0 = arith.constant 0 : i32
    return %arg0, %c0_i32 : i32, i32
  }
  func.func @transform_2(%arg0: i32) -> (i32, i32) {
    %c0_i32 = arith.constant 0 : i32
    %c0_i32_0 = arith.constant 0 : i32
    return %arg0, %c0_i32 : i32, i32
  }
  func.func @transform_3(%arg0: i32) -> (i32, i32) {
    %c0_i32 = arith.constant 0 : i32
    %c0_i32_0 = arith.constant 0 : i32
    %c0_i32_1 = arith.constant 0 : i32
    return %c0_i32, %c0_i32_0 : i32, i32
  }
  func.func @transform_4(%arg0: i32) -> (i32, i32) {
    %c0_i32 = arith.constant 0 : i32
    %c0_i32_0 = arith.constant 0 : i32
    %c0_i32_1 = arith.constant 0 : i32
    return %c0_i32, %c0_i32_0 : i32, i32
  }
  func.func @transform_5(%arg0: i32) -> (i32, i32) {
    %c0_i32 = arith.constant 0 : i32
    %c0_i32_0 = arith.constant 0 : i32
    %c0_i32_1 = arith.constant 0 : i32
    return %c0_i32, %c0_i32_0 : i32, i32
  }
  func.func @transform_6(%arg0: i32) -> (i32, i32) {
    %c0_i32 = arith.constant 0 : i32
    %c0_i32_0 = arith.constant 0 : i32
    %c0_i32_1 = arith.constant 0 : i32
    return %c0_i32, %c0_i32_0 : i32, i32
  }
  func.func @transform_7(%arg0: i32) -> (i32, i32) {
    %c0_i32 = arith.constant 0 : i32
    %c0_i32_0 = arith.constant 0 : i32
    %c0_i32_1 = arith.constant 0 : i32
    return %c0_i32, %c0_i32_0 : i32, i32
  }
  func.func @transform_8(%arg0: i32) -> (i32, i32) {
    %c0_i32 = arith.constant 0 : i32
    %c0_i32_0 = arith.constant 0 : i32
    return %arg0, %c0_i32 : i32, i32
  }
  func.func @transform_9(%arg0: i32) -> (i32, i32) {
    %c0_i32 = arith.constant 0 : i32
    %c0_i32_0 = arith.constant 0 : i32
    return %arg0, %c0_i32 : i32, i32
  }
  func.func @transform_10(%arg0: i32) -> (i32, i32) {
    %c0_i32 = arith.constant 0 : i32
    %c0_i32_0 = arith.constant 0 : i32
    return %arg0, %c0_i32 : i32, i32
  }
}

</mosaic_0001>

<bundles_post_ra>
// kernel: tpu_custom_call.1
= control target key start
LH: loop header
LB: loop body
LE: loop exit
PB: predicated region body
PF: predicated region fallthrough
CT: control target
= control target key end

     0   :  { %s2166_s0 = inlined_call_operand.hbm [shape: bf16[32,64], index: 0, kind: input, shape index: {}]   ;;  %s2167_s1 = inlined_call_operand.hbm [shape: f32[32,32], index: 1, kind: input, shape index: {}]   ;;  %s2168_s2 = inlined_call_operand.hbm [shape: f32[32,32], index: 2, kind: input, shape index: {}]   ;;  %s2169_s3 = inlined_call_operand.hbm [shape: bf16[64,128], index: 3, kind: input, shape index: {}]   ;;  %s2170_s4 = inlined_call_operand.vmem [shape: f32[1,128], index: 4, kind: input, shape index: {}]   ;;  %s2171_s5 = inlined_call_operand.hbm [shape: bf16[32,32], index: 5, kind: input, shape index: {}]   ;;  %s2172_s6 = inlined_call_operand.hbm [shape: bf16[32,64], index: 6, kind: input, shape index: {}]   ;;  %s2173_s7 = inlined_call_operand.vmem [shape: f32[1,64], index: 7, kind: input, shape index: {}]   ;;  %s2174_s8 = inlined_call_operand.hbm [shape: f32[32,160], index: 8, kind: output, shape index: {0}]   ;;  %s2175_s9 = inlined_call_operand.hbm [shape: bf16[32,64], index: 9, kind: output, shape index: {1}]   ;;  %s2176_s10 = inlined_call_operand.hbm [shape: bf16[32,64], index: 10, kind: output, shape index: {2}]  }
   0x1   :  { %2195 = sst [smem:[#allocation29_spill]] %s2167_s1 }
   0x2   :  { %2196 = sst [smem:[#allocation30_spill]] %s2169_s3 }
   0x3   :  { %2197 = sst [smem:[#allocation31_spill]] %s2173_s7 }
   0x4   :  { %2198 = sst [smem:[#allocation32_spill]] %s2175_s9 }
   0x5   :  { %2199 = sst [smem:[#allocation33_spill]] %s2176_s10 }
   0x6   :  { %16 = vsyncpa [#allocation3], 0 }
   0x7   :  { %18 = vsyncpa [#allocation3 + $0x1], 0 }
   0x8   :  { %19 = vsyncpa [#allocation6], 0 }
   0x9   :  { %21 = vsyncpa [#allocation6 + $0x1], 0 }
   0xa   :  { %22 = vsyncpa [#allocation9], 0 }
   0xb   :  { %23 = vsyncpa [#allocation12], 0 }
   0xc   :  { %24 = vsyncpa [#allocation4], 0 }
   0xd   :  { %26 = vsyncpa [#allocation4 + $0x1], 0 }
   0xe   :  { %27 = vsyncpa [#allocation15], 0 }
   0xf   :  { %29 = vsyncpa [#allocation15 + $0x1], 0  ;;  %s1782_s13 = smov 0   ;;  %s1784_s14 = smov 0  }
  0x10   :  { %s1786_s15 = smov 0   ;;  %s1788_s16 = smov 0  }
  0x11 LB: > { %2200 = sst [smem:[#allocation23_spill]] %s1700_s13  ;;  %s1803_s17 = sadd.s32 4294967295, %s1712_s16   ;;  %s1712_s16 = sphi %s1788_s16, %s2231_s16   ;;  %s1708_s15 = sphi %s1786_s15, %s2233_s15   ;;  %s1704_s14 = sphi %s1784_s14, %s2235_s14   ;;  %s1700_s13 = sphi %s1782_s13, %s2234_s13  }
  0x12   : > { %2201 = sst [smem:[#allocation24_spill]] %s1708_s15  ;;  %s2177_s18 = sadd.s32 4294967294, %s1712_s16  }
  0x13   : > { %p55_p0 = scmp.ne.s32.totalorder %s1704_s14, %s1700_s13  ;;  %p2188_p1 = scmp.eq.s32.totalorder %s1803_s17, 0 }
  0x14   : > { %p236_p2 = scmp.eq.s32.totalorder %s1803_s17, 1  ;;  %p242_p3 = scmp.eq.s32.totalorder %s2177_s18, 1 }
  0x15   : > { %p1814_p4 = por %p2188_p1, %p55_p0  ;;  %p1174_p5 = scmp.ge.s32.totalorder %s1712_s16, 1 }
  0x16   : > { %p1819_p6 = por %p242_p3, %p55_p0  ;;  %p301_p7 = scmp.lt.s32.totalorder %s1712_s16, 3 }
  0x17   : > { %s2205_s3 = sld [smem:[#allocation30_spill]]  ;;  %s1714_s25 = smov [#allocation8]  }
  0x18   : > { %s2203_s20 = scalar_select %p1819_p6, 1, 0 }
  0x19   : > { %p1827_p8 = pnand %p1174_p5, %p301_p7  ;;  %s314_s26 = sshll.u32 %s1714_s25, 4  ;;  %s315_s26 = int_to_ptr.vmem [resolvable:$true] %s314_s26 }
  0x1a   : > { %2204 = sst [smem:[#allocation25_spill]] %s2203_s20  ;;  %s1841_s28 = sadd.s32 1, %s1712_s16  }
  0x1b   : > { %p1289_p9 = pneg %p1827_p8  ;;  %2208 = sst [smem:[#allocation26_spill]] %s1841_s28 }
  0x1c   : > { %s2178_s29 = smov 64   ;;  %s2180_s30 = smov 4  }
  0x1d   : > { %s312_s23 = sshll.u32 %s2205_s3, 4  ;;  %p1835_p10 = pnand %p1289_p9, %p2188_p1  ;;  %s313_s23 = int_to_ptr.hbm [resolvable:$true] %s312_s23 }
  0x1e   : > { %s39_s11 = ssub.s32 %s1712_s16, %s1841_s28  ;;  %s42_s12 = sadd.s32 1, %s1708_s15 }
  0x1f   : > { %1292 = dma.hbm_to_vmem [thread:$0]  (!%p1835_p10), %s313_s23, 512, %s315_s26, [#allocation9], %s2178_s29, %s2178_s29, %s2180_s30  }
  0x20   : > { %p40_p12 = scmp.eq.s32.totalorder %s39_s11, 0  ;;  %p49_p13 = scmp.ne.s32.totalorder %s1708_s15, %s1704_s14 }
  0x21   : > { %p50_p0 = scmp.eq.s32.totalorder %s1712_s16, 0  ;;  %p1322_p3 = scmp.lt.s32.totalorder %s1712_s16, 2 }
  0x22   : > { %s1856_s21 = scalar_select %p40_p12, %s1708_s15, %s42_s12  }
  0x23   : > { %p51_p5 = por %p50_p0, %p49_p13  ;;  %p1860_p7 = por %p236_p2, %p49_p13 }
  0x24   : > { %2209 = sst [smem:[#allocation27_spill]] %s1856_s21  ;;  %s1865_s25 = sand.u32 1, %s1708_s15  }
  0x25   : > { %s2210_s22 = scalar_select %p1860_p7, 1, 0 }
  0x26   : > { %s384_s18 = sand.u32 1, %s1712_s16   ;;  %p1868_p9 = pnand %p1322_p3, %p51_p5 }
  0x27   : > { %2211 = sst [smem:[#allocation28_spill]] %s2210_s22  ;;  %s2187_s26 = sshll.u32 %s1865_s25, 4 }
  0x28   : > { %s1250_s11 = sshll.u32 %s1712_s16, 4  ;;  %s2213_s1 = sld [smem:[#allocation29_spill]] }
  0x29   : > { %s388_s3 = scalar_lea.vmem [#allocation5], %s2187_s26  ;;  %s1879_s28 = scalar_lea.sflag [#allocation6], %s384_s18 }
  0x2a   : > { %s396_s21 = sshll.u32 %s388_s3, 4  ;;  %p1428_p12 = pneg %p1868_p9  ;;  %s397_s21 = int_to_ptr.vmem [resolvable:$true] %s396_s21 }
  0x2e   : > { %s393_s30 = scalar_lea.hbm %s2213_s1, %s1250_s11  ;;  %s1431_s26 = scalar_lea.hbm %s2213_s1, 32 }
  0x2f   : > { %s394_s15 = sshll.u32 %s393_s30, 4  ;;  %s395_s15 = int_to_ptr.hbm [resolvable:$true] %s394_s15 }
  0x30   : > { %s1424_s20 = sshra.s32 %s395_s15, 4  ;;  %s1425_s20 = int_to_ptr.hbm [resolvable:$true] %s1424_s20 }
  0x31   : > { %s1426_s13 = scalar_lea.hbm %s1425_s20, 16  ;;  %p1432_p3 = scmp.lt.s32.totalorder %s1425_s20, %s2213_s1 }
  0x32   : > { %p1427_p2 = scmp.ne.s32.totalorder %s1425_s20, %s1426_s13  ;;  %p1433_p5 = scmp.lt.s32.totalorder %s1431_s26, %s1426_s13 }
  0x34   : > { %p1429_p13 = pnand %p1428_p12, %p1427_p2  ;;  %p1434_p11 = por %p1433_p5, %p1432_p3 }
  0x36   : > { %p1430_p0 = pneg %p1429_p13 }
  0x38   : > { %p1435_p1 = pnand %p1434_p11, %p1430_p0 }
  0x3a   : > { %1438 = shalt.err (!%p1435_p1)
}
  0x3b   : > { %s2193_s18 = smov 128   ;;  %s2194_s10 = smov 8  }
  0x3c   : > { %1305 = dma.hbm_to_vmem [thread:$0]  (!%p1868_p9), %s395_s15, 256, %s397_s21, %s1879_s28, %s2193_s18, %s2193_s18, %s2194_s10  }
  0x3d   : > { %s415_s20 = scalar_lea.hbm %s2168_s2, %s1250_s11  ;;  %s2214_s13 = sshll.u32 %s1865_s25, 4 }
  0x3e   : > { %s410_s26 = scalar_lea.vmem [#allocation7], %s2214_s13  ;;  %s416_s30 = sshll.u32 %s415_s20, 4  ;;  %s1926_s30 = int_to_ptr.hbm [resolvable:$true] %s416_s30 }
  0x3f   : > { %s418_s3 = sshll.u32 %s410_s26, 4  ;;  %s329_s7 = sshll.u32 %s2171_s5, 4  ;;  %s1903_s3 = int_to_ptr.vmem [resolvable:$true] %s418_s3  ;;  %s330_s7 = int_to_ptr.hbm [resolvable:$true] %s329_s7 }
  0x40   : > { %s1719_s22 = smov [#allocation10]   ;;  %s343_s29 = sshll.u32 %s2172_s6, 4  ;;  %s344_s29 = int_to_ptr.hbm [resolvable:$true] %s343_s29 }
  0x41   : > { %s331_s15 = sshll.u32 %s1719_s22, 4  ;;  %s2215_s11 = smov 4   ;;  %s332_s15 = int_to_ptr.vmem [resolvable:$true] %s331_s15 }
  0x42   : > { %s2216_s12 = smov 64   ;;  %s1720_s20 = smov [#allocation11]  }
  0x43   : > { %1295 = dma.hbm_to_vmem [thread:$0]  (!%p1835_p10), %s330_s7, 256, %s332_s15, [#allocation9], %s2216_s12, %s2216_s12, %s2215_s11  }
  0x44   : > { %s345_s13 = sshll.u32 %s1720_s20, 4  ;;  %s1179_s26 = sshll.u32 %s1865_s25, 3  ;;  %s346_s13 = int_to_ptr.vmem [resolvable:$true] %s345_s13 }
  0x45   : > { %1298 = dma.hbm_to_vmem [thread:$0]  (!%p1835_p10), %s344_s29, 256, %s346_s13, [#allocation12], %s2216_s12, %s2216_s12, %s2215_s11  }
  0x46   : > { %s1249_s1 = sshll.u32 %s1712_s16, 3  ;;  %s366_s9 = scalar_lea.vmem [#allocation2], %s1179_s26 }
  0x47   : > { %s374_s22 = sshll.u32 %s366_s9, 4  ;;  %s371_s10 = scalar_lea.hbm %s2166_s0, %s1249_s1  ;;  %s375_s22 = int_to_ptr.vmem [resolvable:$true] %s374_s22 }
  0x48   : > { %s372_s7 = sshll.u32 %s371_s10, 4  ;;  %s363_s15 = scalar_lea.sflag [#allocation3], %s1865_s25  ;;  %s373_s7 = int_to_ptr.hbm [resolvable:$true] %s372_s7 }
  0x49   : > { %s1514_s20 = sshra.s32 %s373_s7, 4  ;;  %s1521_s26 = scalar_lea.hbm %s2166_s0, 16  ;;  %s1515_s20 = int_to_ptr.hbm [resolvable:$true] %s1514_s20 }
  0x4a   : > { %s1516_s27 = scalar_lea.hbm %s1515_s20, 8  ;;  %p1522_p2 = scmp.lt.s32.totalorder %s1515_s20, %s2166_s0 }
  0x4b   : > { %p1517_p1 = scmp.ne.s32.totalorder %s1515_s20, %s1516_s27  ;;  %p1523_p13 = scmp.lt.s32.totalorder %s1521_s26, %s1516_s27 }
  0x4d   : > { %p1519_p10 = pnand %p1517_p1, %p1428_p12  ;;  %p1524_p0 = por %p1523_p13, %p1522_p2 }
  0x4f   : > { %p1520_p11 = pneg %p1519_p10 }
  0x51   : > { %p1525_p3 = pnand %p1524_p0, %p1520_p11 }
  0x53   : > { %1528 = shalt.err (!%p1525_p3)
}
  0x54   : > { %1302 = dma.hbm_to_vmem [thread:$0]  (!%p1868_p9), %s373_s7, 128, %s375_s22, %s363_s15, %s2216_s12, %s2216_s12, %s2215_s11  }
  0x55   : > { %s1544_s10 = sshra.s32 %s1926_s30, 4  ;;  %s1551_s20 = scalar_lea.hbm %s2168_s2, 32  ;;  %s1545_s10 = int_to_ptr.hbm [resolvable:$true] %s1544_s10 }
  0x56   : > { %s1546_s25 = scalar_lea.hbm %s1545_s10, 16  ;;  %p1552_p11 = scmp.lt.s32.totalorder %s1545_s10, %s2168_s2 }
  0x57   : > { %p1547_p5 = scmp.ne.s32.totalorder %s1545_s10, %s1546_s25  ;;  %p1553_p2 = scmp.lt.s32.totalorder %s1551_s20, %s1546_s25 }
  0x59   : > { %p1549_p1 = pnand %p1547_p5, %p1428_p12  ;;  %p1554_p13 = por %p1553_p2, %p1552_p11 }
  0x5b   : > { %p1550_p10 = pneg %p1549_p1 }
  0x5d   : > { %p1555_p0 = pnand %p1554_p13, %p1550_p10 }
  0x5f   : > { %1558 = shalt.err (!%p1555_p0)
}
  0x60   : > { %s2217_s11 = smov 8   ;;  %s2218_s12 = smov 128  }
  0x61   : > { %1308 = dma.hbm_to_vmem [thread:$0]  (!%p1868_p9), %s1926_s30, 256, %s1903_s3, %s1879_s28, %s2218_s12, %s2218_s12, %s2217_s11  }
  0x62   : > { %430 = sbr.rel (%p1827_p8) target bundleno = 952 (0x3b8), region = 52  ;;  %s1964_s22 = sand.u32 (!%p1827_p8), 1, %s1704_s14  }
  0x63   : > { %s1967_s7 = sshll.u32 (!%p1827_p8), %s1964_s22, 3  ;;  %s433_s23 = scalar_lea.sflag (!%p1827_p8), [#allocation3], %s1964_s22 }
  0x64   : > { %s436_s15 = scalar_lea.vmem (!%p1827_p8), [#allocation2], %s1967_s7 }
  0x67   : > { %1675 = dma.done.wait (%p1814_p4), %s433_s23, 128  }
  0x68   : > { %1677 = vsyncadd (%p1814_p4), %s433_s23, 4294967168  ;;  %s442_s24 = sand.u32 1, %s1803_s17   ;;  %s1190_s28 = sshll.u32 %s1964_s22, 4 }
  0x69   : > { %s443_s3 = scalar_lea.sflag [#allocation6], %s442_s24  ;;  %s1979_s30 = scalar_lea.vmem [#allocation5], %s1190_s28 }
  0x6a   : > { %1679 = dma.done.wait (%p1814_p4), %s443_s3, 512  }
  0x6b   : > { %1681 = vsyncadd (%p1814_p4), %s443_s3, 4294966784  ;;  %s1985_s13 = scalar_lea.vmem [#allocation7], %s1190_s28  ;;  %p2219_p8 = scmp.eq.s32.totalorder %s1803_s17, 0 }
  0x6d   : > { %1683 = dma.done.wait (%p2219_p8), [#allocation9], 768   ;;  %p2220_p9 = pmov %p2219_p8 }
  0x6e   : > { %p2221_p12 = pmov %p2219_p8 }
  0x6f   : > { %1685 = vsyncadd (%p2220_p9), [#allocation9], 4294966528 }
  0x70   : > { %1687 = dma.done.wait (%p2221_p12), [#allocation12], 256   ;;  %p2222_p3 = pmov %p2219_p8 }
  0x71   : > { %v1256_v0 = vld [vmem:[#allocation8 + $0x18] sm:$0xff]  ;;  %v1255_v1 = vld [vmem:[#allocation8 + $0x10] sm:$0xff]  ;;  %v1254_v2 = vld [vmem:[#allocation8 + $0x8] sm:$0xff]  ;;  %vm579_vm0 = vcmask 523264   ;;  %s1721_s9 = smov 32   ;;  %s1722_s1 = smov 64  }
  0x72   : > { %1689 = vsyncadd (%p2222_p3), [#allocation12], 4294967040  ;;  %587 = vmatpush.bf16.msra.mxu0 %v1256_v0  ;;  %v1253_v3 = vld [vmem:[#allocation8] sm:$0xff]  ;;  %v1252_v4 = vld [vmem:[%s436_s15] sm:$0xff]  ;;  %s1195_s10 = sshll.u32 %s1964_s22, 5  ;;  %vm693_vm1 = vcmask 261120  }
  0x73   : > { %v1372_v5 = vld [vmem:[%s2170_s4] ss:$0 sm:$0xff]  ;;  %v600_v19 = vld [vmem:[%s1985_s13 + $0x8] sm:$0xff]  ;;  %s2016_s25 = scalar_lea.vmem [#allocation13], %s1195_s10  ;;  %v1257_v29 = vld [vmem:[#allocation10] sm:$0xff]  ;;  %vm735_vm2 = vcmask 523520  }
  0x74   : > { %v599_v16 = vld [vmem:[%s1985_s13] sm:$0xff]  ;;  %v2009_v22 = vld [vmem:[%s1979_s30 + $0x8] sm:$0xff]  ;;  %s1723_s18 = smov 96   ;;  %v658_v38 = vmul.f32 %v600_v19, %v600_v19  ;;  %vm746_vm13 = vcmask 785920   ;;  %vm757_vm14 = vcmask 1048320   ;;  %s1262_s21 = sshll.u32 %s1803_s17, 5 }
  0x75   : > { %v657_v23 = vmul.f32 %v599_v16, %v599_v16  ;;  %v1258_v27 = vld [vmem:[#allocation10 + $0x8] sm:$0xff]  ;;  %v597_v40 = vld [vmem:[%s1979_s30] sm:$0xff]  ;;  %v1260_v55 = vld [vmem:[#allocation11 + $0x8] sm:$0xff]  ;;  %s927_s11 = scalar_lea.hbm %s2174_s8, %s1262_s21  ;;  %s928_s12 = sshll.u32 %s2016_s25, 4  ;;  %s929_s12 = int_to_ptr.vmem [resolvable:$true] %s928_s12 }
  0x76   : > { %588 = vmatpush.bf16.msra.mxu0 %v1255_v1  ;;  %703 = vmatpush.bf16.msra.mxu1 %v1258_v27  ;;  %v639_v43 = vmul.f32 %v597_v40, %v597_v40  ;;  %v1259_v56 = vld [vmem:[#allocation11] sm:$0xff]  ;;  %s930_s23 = sshll.u32 %s927_s11, 4  ;;  %s905_s28 = scalar_lea.sflag [#allocation4], %s1964_s22  ;;  %s931_s23 = int_to_ptr.hbm [resolvable:$true] %s930_s23 }
  0x77   : > { %841 = vmatpush.bf16.msra.mxu2 %v1260_v55  ;;  %s1588_s3 = sshra.s32 %s931_s23, 4  ;;  %s1594_s26 = scalar_lea.hbm %s2174_s8, 64  ;;  %s1589_s3 = int_to_ptr.hbm [resolvable:$true] %s1588_s3 }
  0x78   : > { %s1590_s30 = scalar_lea.hbm %s1589_s3, 32  ;;  %p1595_p10 = scmp.lt.s32.totalorder %s1589_s3, %s2174_s8 }
  0x79   : > { %p1591_p4 = scmp.ne.s32.totalorder %s1589_s3, %s1590_s30  ;;  %p1596_p11 = scmp.lt.s32.totalorder %s1594_s26, %s1590_s30 }
  0x7a   : > { %589 = vmatpush.bf16.msra.mxu0 %v1254_v2  ;;  %704 = vmatpush.bf16.msra.mxu1 %v1257_v29  ;;  %v772_v2 = vlaneseq }
  0x7b   : > { %842 = vmatpush.bf16.msra.mxu2 %v1259_v56  ;;  %p1592_p5 = pnand %p1591_p4, %p1860_p7  ;;  %p1597_p2 = por %p1596_p11, %p1595_p10 }
  0x7d   : > { %p1593_p1 = pneg %p1592_p5 }
  0x7e   : > { %590 = vmatpush.bf16.msra.mxu0 %v1253_v3 }
  0x7f   : > { %p1598_p13 = pnand %p1597_p2, %p1593_p1 }
  0x81   : > { %1218 = vmatmul.msk.bf16.vlgmr.msra.gmra.mxu0 %vm579_vm0, %v1252_v4 }
  0xfe   : > { %v592_v6 = vpop.f32.mrf.mxu0 }
  0xff   : > { %v593_v7 = vadd.f32 %v1372_v5, %v592_v6 }
 0x101   : > { %v601_v8 = vmul.f32 0.5, %v593_v7 }
 0x103   : > { %v603_v9 = vmul.f32 1.442695, %v601_v8  ;;  %v773_v8 = vshrl.u32 %v772_v2, 7 }
 0x105   : > { %1374 = vpow2.f32 %v603_v9  ;;  %v640_v9 = vmul.f32 %v2009_v22, %v2009_v22  ;;  %vm774_vm9 = vcmp.lt.s32.totalorder %v773_v8, 1  ;;  %vm779_vm10 = vcmp.lt.s32.totalorder %v773_v8, 5 }
 0x106   : > { %v594_v10 = vpop.f32.mrf.mxu0 }
 0x107   : > { %v595_v11 = vadd.f32 %v1372_v5, %v594_v10 }
 0x109   : > { %v602_v12 = vmul.f32 0.5, %v595_v11 }
 0x10b   : > { %v1375_v13 = vpop.eup %1374  ;;  %v605_v14 = vmul.f32 1.442695, %v602_v12 }
 0x10c   : > { %619 = vrot.lane.b32.xlu0 %v1375_v13, %s1721_s9 }
 0x10d   : > { %1376 = vpow2.f32 %v605_v14 }
 0x113   : > { %v1377_v15 = vpop.eup %1376 }
 0x114   : > { %621 = vrot.lane.b32.xlu0 %v1377_v15, %s1721_s9 }
 0x11c   : > { %611 = vrot.lane.b32.xlu0 %v1377_v15, %s1722_s1  ;;  %v782_v15 = vadd.s32 8, %v773_v8 }
 0x124   : > { %645 = vrot.lane.b32.xlu0 %v593_v7, %s1722_s1 }
 0x17e   : > { %v620_v17 = vpop.permute.xlu0 %619 }
 0x17f   : > { %v625_v18 = vmul.f32 %v620_v17, %v599_v16 }
 0x181   : > { %629 = vrot.lane.b32.xlu1 %v625_v18, %s1721_s9 }
 0x186   : > { %v622_v20 = vpop.permute.xlu0 %621 }
 0x187   : > { %v626_v21 = vmul.f32 %v622_v20, %v600_v19  ;;  %v787_v20 = vand.u32 3, %v773_v8 }
 0x189   : > { %631 = vrot.lane.b32.xlu1 %v626_v21, %s1721_s9  ;;  %v794_v21 = vand.u32 3, %v782_v15  ;;  %vm807_vm11 = vcmp.ge.s32.totalorder %v787_v20, 1 }
 0x18b   : > { %vm808_vm12 = vcmp.ge.s32.totalorder %v794_v21, 1 }
 0x18e   : > { %v612_v24 = vpop.permute.xlu0 %611 }
 0x18f   : > { %v616_v25 = vmul.f32 %v612_v24, %v2009_v22 }
 0x191   : > { %v2013_v26 = vadd.f32 %v616_v25, %v595_v11  ;;  %661 = vrot.lane.b32.xlu1 %v657_v23, %s1721_s9 }
 0x193   : > { %734 = vst.msk [vmem:[%s2016_s25 + $0x10] sm:$0xff] %vm693_vm1, %v2013_v26  ;;  %v638_v10 = vmul.f32 %v2013_v26, %v2013_v26 }
 0x195   : > { %v642_v16 = vsub.f32 %v638_v10, %v640_v9 }
 0x196   : > { %v2040_v47 = vpop.permute.xlu0 %645 }
 0x199   : > { %647 = vrot.lane.b32.xlu1 %v595_v11, %s1722_s1 }
 0x1f3   : > { %v630_v28 = vpop.permute.xlu1 %629 }
 0x1f4   : > { %v635_v30 = vadd.f32 %v630_v28, %v593_v7 }
 0x1f6   : > { %v2022_v33 = vmul.f32 %v635_v30, %v635_v30 }
 0x1fb   : > { %v632_v31 = vpop.permute.xlu1 %631 }
 0x1fc   : > { %v636_v32 = vadd.f32 %v632_v31, %v595_v11 }
 0x1fe   : > { %v656_v34 = vmul.f32 %v636_v32, %v636_v32  ;;  %737 = vst.msk [vmem:[%s2016_s25 + $0x10] sm:$0xff] %vm735_vm2, %v636_v32 }
 0x200   : > { %v673_v35 = vpack.c.bf16 %v656_v34, %v2022_v33 }
 0x202   : > { %679 = vrot.lane.b32.xlu2 %v673_v35, %s1723_s18 }
 0x203   : > { %v2028_v36 = vpop.permute.xlu1 %661 }
 0x204   : > { %v667_v37 = vsub.f32 %v2022_v33, %v2028_v36 }
 0x20a   : > { %609 = vrot.lane.b32.xlu2 %v1375_v13, %s1722_s1 }
 0x20b   : > { %v648_v52 = vpop.permute.xlu1 %647 }
 0x20c   : > { %v652_v18 = vsub.f32 %v642_v16, %v648_v52 }
 0x20e   : > { %v654_v23 = vmul.f32 0.5, %v652_v18 }
 0x212   : > { %663 = vrot.lane.b32.xlu2 %v658_v38, %s1721_s9 }
 0x25c   : > { %v680_v39 = vpop.permute.xlu2 %679 }
 0x25d   : > { %1227 = vmatmul.msk.bf16.vlgmr.msra.gmra.mxu1 %vm693_vm1, %v680_v39 }
 0x264   : > { %v610_v41 = vpop.permute.xlu2 %609 }
 0x265   : > { %v615_v42 = vmul.f32 %v610_v41, %v597_v40 }
 0x267   : > { %v617_v44 = vadd.f32 %v615_v42, %v593_v7 }
 0x269   : > { %v637_v45 = vmul.f32 %v617_v44, %v617_v44  ;;  %733 = vst.msk [vmem:[%s2016_s25] sm:$0xff] %vm693_vm1, %v617_v44 }
 0x26a   : > { %736 = vst.msk [vmem:[%s2016_s25] sm:$0xff] %vm735_vm2, %v635_v30  ;;  %v669_v30 = vsub.f32 %v667_v37, %v2040_v47 }
 0x26b   : > { %v641_v46 = vsub.f32 %v637_v45, %v639_v43 }
 0x26c   : > { %v664_v48 = vpop.permute.xlu2 %663  ;;  %v671_v40 = vmul.f32 0.5, %v669_v30 }
 0x26d   : > { %v651_v49 = vsub.f32 %v641_v46, %v2040_v47  ;;  %v668_v50 = vsub.f32 %v656_v34, %v664_v48 }
 0x26f   : > { %v653_v51 = vmul.f32 0.5, %v651_v49  ;;  %v670_v53 = vsub.f32 %v668_v50, %v648_v52 }
 0x271   : > { %751 = vrot.lane.b32.xlu1 %v653_v51, %s1723_s18  ;;  %v672_v54 = vmul.f32 0.5, %v670_v53 }
 0x279   : > { %764 = vrot.lane.b32.xlu1 %v672_v54, %s1723_s18 }
 0x2da   : > { %v706_v57 = vpop.f32.mrf.mxu1 }
 0x2db   : > { %v707_v58 = vadd.f32 1e-06, %v706_v57 }
 0x2dd   : > { %1378 = vrsqrt.f32 %v707_v58  ;;  %vm717_vm4 = vweird.f32 %v707_v58 }
 0x2e2   : > { %v708_v59 = vpop.f32.mrf.mxu1 }
 0x2e3   : > { %v1379_v60 = vpop.eup %1378  ;;  %v709_v61 = vadd.f32 1e-06, %v708_v59  ;;  %v752_v62 = vpop.permute.xlu1 %751 }
 0x2e4   : > { %v712_v63 = vmul.f32 %v1379_v60, %v707_v58  ;;  %vm718_vm3 = vweird.f32 %v1379_v60 }
 0x2e5   : > { %1380 = vrsqrt.f32 %v709_v61  ;;  %vm719_vm5 = vmor %vm717_vm4, %vm718_vm3  ;;  %vm727_vm7 = vweird.f32 %v709_v61 }
 0x2e6   : > { %v713_v0 = vmul.f32 %v1379_v60, %v712_v63 }
 0x2e8   : > { %v714_v1 = vmul.f32 0.5, %v713_v0 }
 0x2ea   : > { %v715_v3 = vsub.f32 1.5, %v714_v1 }
 0x2eb   : > { %v1381_v4 = vpop.eup %1380  ;;  %v765_v5 = vpop.permute.xlu1 %764 }
 0x2ec   : > { %v722_v6 = vmul.f32 %v1381_v4, %v709_v61  ;;  %769 = vst.msk [vmem:[%s2016_s25 + $0x18] sm:$0xff] %vm693_vm1, %v765_v5  ;;  %v716_v7 = vmul.f32 %v1379_v60, %v715_v3  ;;  %vm728_vm6 = vweird.f32 %v1381_v4 }
 0x2ed   : > { %vm729_vm8 = vmor %vm727_vm7, %vm728_vm6 }
 0x2ee   : > { %v723_v11 = vmul.f32 %v1381_v4, %v722_v6  ;;  %v720_v12 = vsel %vm719_vm5, %v1379_v60, %v716_v7 }
 0x2ef   : > { %v731_v13 = vmul.f32 %v720_v12, %v617_v44 }
 0x2f0   : > { %v724_v14 = vmul.f32 0.5, %v723_v11 }
 0x2f1   : > { %740 = vrot.lane.b32.xlu2 %v731_v13, %s1722_s1  ;;  %v770_v25 = vrot.slane %v731_v13, 7  ;;  %v777_v27 = vrot.slane %v731_v13, 3 }
 0x2f2   : > { %v725_v17 = vsub.f32 1.5, %v724_v14 }
 0x2f4   : > { %v726_v19 = vmul.f32 %v1381_v4, %v725_v17 }
 0x2f6   : > { %v730_v22 = vsel %vm729_vm8, %v1381_v4, %v726_v19 }
 0x2f7   : > { %v732_v24 = vmul.f32 %v730_v22, %v2013_v26 }
 0x2f9   : > { %742 = vrot.lane.b32.xlu0 %v732_v24, %s1722_s1  ;;  %v771_v28 = vrot.slane %v732_v24, 7  ;;  %v778_v29 = vrot.slane %v732_v24, 3  ;;  %753 = vrot.lane.b32.xlu2 %v654_v23, %s1723_s18 }
 0x2fb   : > { %v775_v26 = vsel %vm774_vm9, %v770_v25, %v771_v28  ;;  %v776_v31 = vsel %vm774_vm9, %v771_v28, %v770_v25  ;;  %v780_v32 = vsel %vm779_vm10, %v777_v27, %v778_v29  ;;  %v781_v34 = vsel %vm779_vm10, %v778_v29, %v777_v27 }
 0x2fc   : > { %v809_v35 = vsel %vm807_vm11, %v776_v31, %v780_v32  ;;  %v810_v38 = vsel %vm808_vm12, %v775_v26, %v781_v34 }
 0x2fd   : > { %v811_v39 = vpack.c.bf16 %v810_v38, %v809_v35 }
 0x2ff   : > { %1236 = vmatmul.msk.bf16.vlgmr.msra.gmra.mxu2 %vm693_vm1, %v811_v39 }
 0x301   : > { %762 = vrot.lane.b32.xlu0 %v671_v40, %s1723_s18 }
 0x34b   : > { %v741_v33 = vpop.permute.xlu2 %740 }
 0x34c   : > { %747 = vst.msk [vmem:[%s2016_s25] sm:$0xff] %vm746_vm13, %v741_v33 }
 0x34d   : > { %758 = vst.msk [vmem:[%s2016_s25] sm:$0xff] %vm757_vm14, %v752_v62 }
 0x353   : > { %v754_v37 = vpop.permute.xlu2 %753 }
 0x36b   : > { %v743_v36 = vpop.permute.xlu0 %742 }
 0x36c   : > { %748 = vst.msk [vmem:[%s2016_s25 + $0x10] sm:$0xff] %vm746_vm13, %v743_v36 }
 0x36d   : > { %759 = vst.msk [vmem:[%s2016_s25 + $0x10] sm:$0xff] %vm757_vm14, %v754_v37 }
 0x373   : > { %v763_v41 = vpop.permute.xlu0 %762 }
 0x374   : > { %768 = vst.msk [vmem:[%s2016_s25 + $0x8] sm:$0xff] %vm693_vm1, %v763_v41 }
 0x375   : > { %1601 = shalt.err (!%p1598_p13)
}
 0x376   : > { %s1724_s22 = smov 256   ;;  %s1725_s25 = smov 16   ;;  %v536_v54 = vld [vmem:[%s436_s15] sm:$0xff]   ;;  %vm897_vm0 = vcmask 519168  }
 0x377   : > { %1283 = dma.vmem_to_hbm [thread:$0]  (%p1860_p7), %s929_s12, 512, %s931_s23, %s905_s28, %s1724_s22, %s1724_s22, %s1725_s25   ;;  %v867_v57 = vunpack.c.l.bf16 %v536_v54  ;;  %v868_v3 = vunpack.c.h.bf16 %v536_v54 }
 0x378   : > { %s2224_s20 = sld [smem:[#allocation31_spill]]  ;;  %s1263_s15 = sshll.u32 %s1803_s17, 3 }
 0x379   : > { %s521_s27 = scalar_lea.vmem [#allocation14], %s1967_s7  ;;  %s2225_s23 = sld [smem:[#allocation32_spill]] }
 0x37a   : > { %s945_s3 = sshll.u32 %s521_s27, 4  ;;  %s2226_s19 = sld [smem:[#allocation33_spill]]  ;;  %s2102_s3 = int_to_ptr.vmem [resolvable:$true] %s945_s3 }
 0x37b   : > { %s2098_s10 = scalar_lea.vmem [#allocation16], %s1967_s7  ;;  %s2112_s7 = scalar_lea.sflag [#allocation15], %s442_s24 }
 0x37c   : > { %s962_s25 = sshll.u32 %s2098_s10, 4  ;;  %s2108_s25 = int_to_ptr.vmem [resolvable:$true] %s962_s25 }
 0x37e   : > { %v1373_v42 = vld [vmem:[%s2224_s20] ss:$0 sm:$0xff] }
 0x37f   : > { %s944_s28 = scalar_lea.hbm %s2225_s23, %s1263_s15  ;;  %s1622_s11 = scalar_lea.hbm %s2225_s23, 16 }
 0x380   : > { %s961_s26 = scalar_lea.hbm %s2226_s19, %s1263_s15  ;;  %s947_s9 = sshll.u32 %s944_s28, 4  ;;  %s948_s9 = int_to_ptr.hbm [resolvable:$true] %s947_s9 }
 0x381   : > { %s964_s22 = sshll.u32 %s961_s26, 4  ;;  %s1616_s18 = sshra.s32 %s948_s9, 4  ;;  %s2106_s22 = int_to_ptr.hbm [resolvable:$true] %s964_s22  ;;  %s1617_s18 = int_to_ptr.hbm [resolvable:$true] %s1616_s18 }
 0x382   : > { %v844_v43 = vpop.f32.mrf.mxu2  ;;  %s1618_s21 = scalar_lea.hbm %s1617_s18, 8  ;;  %p1623_p12 = scmp.lt.s32.totalorder %s1617_s18, %s2225_s23 }
 0x383   : > { %v845_v44 = vadd.f32 %v1373_v42, %v844_v43  ;;  %p1619_p0 = scmp.ne.s32.totalorder %s1617_s18, %s1618_s21  ;;  %p1624_p3 = scmp.lt.s32.totalorder %s1622_s11, %s1618_s21 }
 0x385   : > { %v849_v45 = vand.u32 2147483647, %v845_v44  ;;  %v869_v60 = vmax.f32 %v845_v44, 0.0  ;;  %v871_v61 = vmul.f32 %v867_v57, %v845_v44  ;;  %vm861_vm15 = vcmp.ge.f32.partialorder %v845_v44, 0.0  ;;  %p1620_p8 = pnand %p1619_p0, %p1860_p7  ;;  %p1625_p4 = por %p1624_p3, %p1623_p12 }
 0x387   : > { %v851_v46 = vsub.f32 0.0, %v849_v45  ;;  %v873_v8 = vsub.f32 %v869_v60, %v871_v61  ;;  %p1621_p9 = pneg %p1620_p8 }
 0x389   : > { %v853_v47 = vmul.f32 1.442695, %v851_v46  ;;  %p1626_p5 = pnand %p1625_p4, %p1621_p9 }
 0x38a   : > { %v846_v48 = vpop.f32.mrf.mxu2 }
 0x38b   : > { %1382 = vpow2.f32 %v853_v47  ;;  %v847_v49 = vadd.f32 %v1373_v42, %v846_v48 }
 0x38d   : > { %v850_v50 = vand.u32 2147483647, %v847_v49  ;;  %v870_v14 = vmax.f32 %v847_v49, 0.0  ;;  %v872_v15 = vmul.f32 %v868_v3, %v847_v49  ;;  %vm862_vm2 = vcmp.ge.f32.partialorder %v847_v49, 0.0 }
 0x38f   : > { %v852_v51 = vsub.f32 0.0, %v850_v50  ;;  %v874_v23 = vsub.f32 %v870_v14, %v872_v15 }
 0x391   : > { %v1383_v52 = vpop.eup %1382  ;;  %v855_v53 = vmul.f32 1.442695, %v852_v51 }
 0x392   : > { %v857_v55 = vadd.f32 1.0, %v1383_v52  ;;  %v878_v56 = vmul.f32 -0.5, %v1383_v52  ;;  %v881_v62 = vand.u32 2147483647, %v1383_v52 }
 0x393   : > { %1384 = vpow2.f32 %v855_v53 }
 0x394   : > { %1386 = vrcp.f32 %v857_v55  ;;  %v879_v58 = vadd.f32 1.0, %v878_v56  ;;  %vm882_vm1 = vcmp.lt.f32.partialorder %v881_v62, 0.0004427343 }
 0x395   : > { %1388 = vlog2.f32 %v857_v55 }
 0x396   : > { %v880_v5 = vmul.f32 %v1383_v52, %v879_v58 }
 0x399   : > { %v1385_v59 = vpop.eup %1384 }
 0x39a   : > { %v1387_v63 = vpop.eup %1386  ;;  %v858_v0 = vadd.f32 1.0, %v1385_v59  ;;  %v887_v6 = vmul.f32 -0.5, %v1385_v59  ;;  %v890_v16 = vand.u32 2147483647, %v1385_v59 }
 0x39b   : > { %v1389_v1 = vpop.eup %1388  ;;  %v863_v2 = vmul.f32 %v1387_v63, %v1383_v52 }
 0x39c   : > { %v877_v4 = vmul.f32 0.6931472, %v1389_v1  ;;  %1390 = vrcp.f32 %v858_v0  ;;  %v888_v12 = vadd.f32 1.0, %v887_v6  ;;  %vm891_vm3 = vcmp.lt.f32.partialorder %v890_v16, 0.0004427343 }
 0x39d   : > { %v865_v7 = vsel %vm861_vm15, %v1387_v63, %v863_v2  ;;  %1392 = vlog2.f32 %v858_v0 }
 0x39e   : > { %v883_v9 = vsel %vm882_vm1, %v880_v5, %v877_v4  ;;  %v895_v10 = vpack.c.bf16 %v865_v7, %v865_v7  ;;  %v889_v21 = vmul.f32 %v1385_v59, %v888_v12 }
 0x39f   : > { %v893_v11 = vadd.f32 %v883_v9, %v873_v8 }
 0x3a0   : > { %898 = vst.msk [vmem:[%s521_s27] sm:$0xf] %vm897_vm0, %v895_v10 }
 0x3a1   : > { %v900_v13 = vpack.c.bf16 %v893_v11, %v893_v11 }
 0x3a2   : > { %v1391_v17 = vpop.eup %1390 }
 0x3a3   : > { %v1393_v18 = vpop.eup %1392  ;;  %v864_v19 = vmul.f32 %v1391_v17, %v1385_v59  ;;  %902 = vst.msk [vmem:[%s2098_s10] sm:$0xf] %vm897_vm0, %v900_v13 }
 0x3a4   : > { %v886_v20 = vmul.f32 0.6931472, %v1393_v18 }
 0x3a5   : > { %v866_v22 = vsel %vm862_vm2, %v1391_v17, %v864_v19 }
 0x3a6   : > { %v892_v24 = vsel %vm891_vm3, %v889_v21, %v886_v20  ;;  %v896_v25 = vpack.c.bf16 %v866_v22, %v866_v22 }
 0x3a7   : > { %v894_v27 = vadd.f32 %v892_v24, %v874_v23 }
 0x3a8   : > { %899 = vst.msk [vmem:[%s521_s27 + $0x4] sm:$0xf] %vm897_vm0, %v896_v25 }
 0x3a9   : > { %v901_v28 = vpack.c.bf16 %v894_v27, %v894_v27 }
 0x3aa   : > { %1629 = shalt.err (!%p1626_p5)
}
 0x3ab   : > { %s1726_s17 = smov 4   ;;  %903 = vst.msk [vmem:[%s2098_s10 + $0x4] sm:$0xf] %vm897_vm0, %v901_v28  ;;  %s1644_s24 = sshra.s32 %s2106_s22, 4  ;;  %s1645_s24 = int_to_ptr.hbm [resolvable:$true] %s1644_s24 }
 0x3ac   : > { %1284 = dma.vmem_to_hbm [thread:$0]  (%p1860_p7), %s2102_s3, 128, %s948_s9, %s2112_s7, %s1722_s1, %s1722_s1, %s1726_s17  }
 0x3ad   : > { %s1646_s28 = scalar_lea.hbm %s1645_s24, 8  ;;  %s1650_s26 = scalar_lea.hbm %s2226_s19, 16 }
 0x3ae   : > { %p1647_p1 = scmp.ne.s32.totalorder %s1645_s24, %s1646_s28  ;;  %p1651_p2 = scmp.lt.s32.totalorder %s1645_s24, %s2226_s19 }
 0x3af   : > { %p1652_p13 = scmp.lt.s32.totalorder %s1650_s26, %s1646_s28 }
 0x3b0   : > { %p1648_p10 = pnand %p1647_p1, %p1860_p7 }
 0x3b1   : > { %p1653_p0 = por %p1652_p13, %p1651_p2 }
 0x3b2   : > { %p1649_p11 = pneg %p1648_p10 }
 0x3b4   : > { %p1654_p8 = pnand %p1653_p0, %p1649_p11 }
 0x3b6   : > { %1657 = shalt.err (!%p1654_p8)
}
 0x3b7   : > { %1285 = dma.vmem_to_hbm [thread:$0]  (%p1860_p7), %s2108_s25, 128, %s2106_s22, %s2112_s7, %s1722_s1, %s1722_s1, %s1726_s17  }
 0x3b8 PF: > { %s2227_s3 = sld [smem:[#allocation23_spill]]  ;;  %p2229_p9 = scmp.ge.s32.totalorder %s1712_s16, 2 }
 0x3ba   : > { %p1310_p12 = pnand %p2229_p9, %p1819_p6 }
 0x3bc   : > { %p1311_p3 = pneg %p1310_p12 }
 0x3be   : > { %s979_s10 = sand.u32 1, %s2227_s3  }
 0x3bf   : > { %s980_s20 = scalar_lea.sflag [#allocation4], %s979_s10 }
 0x3c0   : > { %1691 = dma.done.wait (%p1311_p3), %s980_s20, 512  }
 0x3c1   : > { %1693 = vsyncadd (%p1311_p3), %s980_s20, 4294966784  ;;  %s2230_s29 = sadd.s32 4294967294, %s1712_s16  }
 0x3c2   : > { %s989_s15 = sand.u32 1, %s2230_s29  }
 0x3c3   : > { %s990_s11 = scalar_lea.sflag [#allocation15], %s989_s15 }
 0x3c4   : > { %1695 = dma.done.wait (%p1311_p3), %s990_s11, 256  }
 0x3c5   : > { %1697 = vsyncadd (%p1311_p3), %s990_s11, 4294967040  ;;  %s2231_s16 = sld [smem:[#allocation26_spill]]  ;;  %s2234_s13 = smov %s1704_s14 }
 0x3c6   : > { %s2232_s1 = sld [smem:[#allocation24_spill]] }
 0x3c7   : > { %s2233_s15 = sld [smem:[#allocation27_spill]] }
 0x3cb   : > { %p32_p7 = scmp.ge.s32.totalorder %s2231_s16, 4  }
 0x3cc   : > { %s2235_s14 = smov %s2232_s1 }
 0x3cd   :  { %34 = sbr.rel (!%p32_p7) target bundleno = 17 (0x11), region = 165 }
 0x3d2   :  { %1006 = vsyncpa [#allocation3], 1 }
 0x3d3   :  { %1008 = vsyncpa [#allocation3 + $0x1], 1 }
 0x3d4   :  { %1009 = vsyncpa [#allocation6], 1 }
 0x3d5   :  { %1011 = vsyncpa [#allocation6 + $0x1], 1 }
 0x3d6   :  { %1012 = vsyncpa [#allocation9], 1 }
 0x3d7   :  { %1013 = vsyncpa [#allocation12], 1 }
 0x3d8   :  { %1014 = vsyncpa [#allocation4], 1 }
 0x3d9   :  { %1016 = vsyncpa [#allocation4 + $0x1], 1 }
 0x3da   :  { %1017 = vsyncpa [#allocation15], 1 }
 0x3db   :  { %1019 = vsyncpa [#allocation15 + $0x1], 1 }

// kernel: tpu_custom_call.1
= control target key start
LH: loop header
LB: loop body
LE: loop exit
PB: predicated region body
PF: predicated region fallthrough
CT: control target
= control target key end

     0   :  { %s2166_s0 = inlined_call_operand.hbm [shape: bf16[32,64], index: 0, kind: input, shape index: {}]   ;;  %s2167_s1 = inlined_call_operand.hbm [shape: f32[32,32], index: 1, kind: input, shape index: {}]   ;;  %s2168_s2 = inlined_call_operand.hbm [shape: f32[32,32], index: 2, kind: input, shape index: {}]   ;;  %s2169_s3 = inlined_call_operand.hbm [shape: bf16[64,128], index: 3, kind: input, shape index: {}]   ;;  %s2170_s4 = inlined_call_operand.vmem [shape: f32[1,128], index: 4, kind: input, shape index: {}]   ;;  %s2171_s5 = inlined_call_operand.hbm [shape: bf16[32,32], index: 5, kind: input, shape index: {}]   ;;  %s2172_s6 = inlined_call_operand.hbm [shape: bf16[32,64], index: 6, kind: input, shape index: {}]   ;;  %s2173_s7 = inlined_call_operand.vmem [shape: f32[1,64], index: 7, kind: input, shape index: {}]   ;;  %s2174_s8 = inlined_call_operand.hbm [shape: f32[32,160], index: 8, kind: output, shape index: {0}]   ;;  %s2175_s9 = inlined_call_operand.hbm [shape: bf16[32,64], index: 9, kind: output, shape index: {1}]   ;;  %s2176_s10 = inlined_call_operand.hbm [shape: bf16[32,64], index: 10, kind: output, shape index: {2}]  }
   0x1   :  { %2195 = sst [smem:[#allocation29_spill]] %s2167_s1 }
   0x2   :  { %2196 = sst [smem:[#allocation30_spill]] %s2169_s3 }
   0x3   :  { %2197 = sst [smem:[#allocation31_spill]] %s2173_s7 }
   0x4   :  { %2198 = sst [smem:[#allocation32_spill]] %s2175_s9 }
   0x5   :  { %2199 = sst [smem:[#allocation33_spill]] %s2176_s10 }
   0x6   :  { %16 = vsyncpa [#allocation3], 0 }
   0x7   :  { %18 = vsyncpa [#allocation3 + $0x1], 0 }
   0x8   :  { %19 = vsyncpa [#allocation6], 0 }
   0x9   :  { %21 = vsyncpa [#allocation6 + $0x1], 0 }
   0xa   :  { %22 = vsyncpa [#allocation9], 0 }
   0xb   :  { %23 = vsyncpa [#allocation12], 0 }
   0xc   :  { %24 = vsyncpa [#allocation4], 0 }
   0xd   :  { %26 = vsyncpa [#allocation4 + $0x1], 0 }
   0xe   :  { %27 = vsyncpa [#allocation15], 0 }
   0xf   :  { %29 = vsyncpa [#allocation15 + $0x1], 0  ;;  %s1782_s13 = smov 0   ;;  %s1784_s14 = smov 0  }
  0x10   :  { %s1786_s15 = smov 0   ;;  %s1788_s16 = smov 0  }
  0x11 LB: > { %2200 = sst [smem:[#allocation23_spill]] %s1700_s13  ;;  %s1803_s17 = sadd.s32 4294967295, %s1712_s16   ;;  %s1712_s16 = sphi %s1788_s16, %s2231_s16   ;;  %s1708_s15 = sphi %s1786_s15, %s2233_s15   ;;  %s1704_s14 = sphi %s1784_s14, %s2235_s14   ;;  %s1700_s13 = sphi %s1782_s13, %s2234_s13  }
  0x12   : > { %2201 = sst [smem:[#allocation24_spill]] %s1708_s15  ;;  %s2177_s18 = sadd.s32 4294967294, %s1712_s16  }
  0x13   : > { %p55_p0 = scmp.ne.s32.totalorder %s1704_s14, %s1700_s13  ;;  %p2188_p1 = scmp.eq.s32.totalorder %s1803_s17, 0 }
  0x14   : > { %p236_p2 = scmp.eq.s32.totalorder %s1803_s17, 1  ;;  %p242_p3 = scmp.eq.s32.totalorder %s2177_s18, 1 }
  0x15   : > { %p1814_p4 = por %p2188_p1, %p55_p0  ;;  %p1174_p5 = scmp.ge.s32.totalorder %s1712_s16, 1 }
  0x16   : > { %p1819_p6 = por %p242_p3, %p55_p0  ;;  %p301_p7 = scmp.lt.s32.totalorder %s1712_s16, 3 }
  0x17   : > { %s2205_s3 = sld [smem:[#allocation30_spill]]  ;;  %s1714_s25 = smov [#allocation8]  }
  0x18   : > { %s2203_s20 = scalar_select %p1819_p6, 1, 0 }
  0x19   : > { %p1827_p8 = pnand %p1174_p5, %p301_p7  ;;  %s314_s26 = sshll.u32 %s1714_s25, 4  ;;  %s315_s26 = int_to_ptr.vmem [resolvable:$true] %s314_s26 }
  0x1a   : > { %2204 = sst [smem:[#allocation25_spill]] %s2203_s20  ;;  %s1841_s28 = sadd.s32 1, %s1712_s16  }
  0x1b   : > { %p1289_p9 = pneg %p1827_p8  ;;  %2208 = sst [smem:[#allocation26_spill]] %s1841_s28 }
  0x1c   : > { %s2178_s29 = smov 64   ;;  %s2180_s30 = smov 4  }
  0x1d   : > { %s312_s23 = sshll.u32 %s2205_s3, 4  ;;  %p1835_p10 = pnand %p1289_p9, %p2188_p1  ;;  %s313_s23 = int_to_ptr.hbm [resolvable:$true] %s312_s23 }
  0x1e   : > { %s39_s11 = ssub.s32 %s1712_s16, %s1841_s28  ;;  %s42_s12 = sadd.s32 1, %s1708_s15 }
  0x1f   : > { %1292 = dma.hbm_to_vmem [thread:$0]  (!%p1835_p10), %s313_s23, 512, %s315_s26, [#allocation9], %s2178_s29, %s2178_s29, %s2180_s30  }
  0x20   : > { %p40_p12 = scmp.eq.s32.totalorder %s39_s11, 0  ;;  %p49_p13 = scmp.ne.s32.totalorder %s1708_s15, %s1704_s14 }
  0x21   : > { %p50_p0 = scmp.eq.s32.totalorder %s1712_s16, 0  ;;  %p1322_p3 = scmp.lt.s32.totalorder %s1712_s16, 2 }
  0x22   : > { %s1856_s21 = scalar_select %p40_p12, %s1708_s15, %s42_s12  }
  0x23   : > { %p51_p5 = por %p50_p0, %p49_p13  ;;  %p1860_p7 = por %p236_p2, %p49_p13 }
  0x24   : > { %2209 = sst [smem:[#allocation27_spill]] %s1856_s21  ;;  %s1865_s25 = sand.u32 1, %s1708_s15  }
  0x25   : > { %s2210_s22 = scalar_select %p1860_p7, 1, 0 }
  0x26   : > { %s384_s18 = sand.u32 1, %s1712_s16   ;;  %p1868_p9 = pnand %p1322_p3, %p51_p5 }
  0x27   : > { %2211 = sst [smem:[#allocation28_spill]] %s2210_s22  ;;  %s2187_s26 = sshll.u32 %s1865_s25, 4 }
  0x28   : > { %s1250_s11 = sshll.u32 %s1712_s16, 4  ;;  %s2213_s1 = sld [smem:[#allocation29_spill]] }
  0x29   : > { %s388_s3 = scalar_lea.vmem [#allocation5], %s2187_s26  ;;  %s1879_s28 = scalar_lea.sflag [#allocation6], %s384_s18 }
  0x2a   : > { %s396_s21 = sshll.u32 %s388_s3, 4  ;;  %p1428_p12 = pneg %p1868_p9  ;;  %s397_s21 = int_to_ptr.vmem [resolvable:$true] %s396_s21 }
  0x2e   : > { %s393_s30 = scalar_lea.hbm %s2213_s1, %s1250_s11  ;;  %s1431_s26 = scalar_lea.hbm %s2213_s1, 32 }
  0x2f   : > { %s394_s15 = sshll.u32 %s393_s30, 4  ;;  %s395_s15 = int_to_ptr.hbm [resolvable:$true] %s394_s15 }
  0x30   : > { %s1424_s20 = sshra.s32 %s395_s15, 4  ;;  %s1425_s20 = int_to_ptr.hbm [resolvable:$true] %s1424_s20 }
  0x31   : > { %s1426_s13 = scalar_lea.hbm %s1425_s20, 16  ;;  %p1432_p3 = scmp.lt.s32.totalorder %s1425_s20, %s2213_s1 }
  0x32   : > { %p1427_p2 = scmp.ne.s32.totalorder %s1425_s20, %s1426_s13  ;;  %p1433_p5 = scmp.lt.s32.totalorder %s1431_s26, %s1426_s13 }
  0x34   : > { %p1429_p13 = pnand %p1428_p12, %p1427_p2  ;;  %p1434_p11 = por %p1433_p5, %p1432_p3 }
  0x36   : > { %p1430_p0 = pneg %p1429_p13 }
  0x38   : > { %p1435_p1 = pnand %p1434_p11, %p1430_p0 }
  0x3a   : > { %1438 = shalt.err (!%p1435_p1)
}
  0x3b   : > { %s2193_s18 = smov 128   ;;  %s2194_s10 = smov 8  }
  0x3c   : > { %1305 = dma.hbm_to_vmem [thread:$0]  (!%p1868_p9), %s395_s15, 256, %s397_s21, %s1879_s28, %s2193_s18, %s2193_s18, %s2194_s10  }
  0x3d   : > { %s415_s20 = scalar_lea.hbm %s2168_s2, %s1250_s11  ;;  %s2214_s13 = sshll.u32 %s1865_s25, 4 }
  0x3e   : > { %s410_s26 = scalar_lea.vmem [#allocation7], %s2214_s13  ;;  %s416_s30 = sshll.u32 %s415_s20, 4  ;;  %s1926_s30 = int_to_ptr.hbm [resolvable:$true] %s416_s30 }
  0x3f   : > { %s418_s3 = sshll.u32 %s410_s26, 4  ;;  %s329_s7 = sshll.u32 %s2171_s5, 4  ;;  %s1903_s3 = int_to_ptr.vmem [resolvable:$true] %s418_s3  ;;  %s330_s7 = int_to_ptr.hbm [resolvable:$true] %s329_s7 }
  0x40   : > { %s1719_s22 = smov [#allocation10]   ;;  %s343_s29 = sshll.u32 %s2172_s6, 4  ;;  %s344_s29 = int_to_ptr.hbm [resolvable:$true] %s343_s29 }
  0x41   : > { %s331_s15 = sshll.u32 %s1719_s22, 4  ;;  %s2215_s11 = smov 4   ;;  %s332_s15 = int_to_ptr.vmem [resolvable:$true] %s331_s15 }
  0x42   : > { %s2216_s12 = smov 64   ;;  %s1720_s20 = smov [#allocation11]  }
  0x43   : > { %1295 = dma.hbm_to_vmem [thread:$0]  (!%p1835_p10), %s330_s7, 256, %s332_s15, [#allocation9], %s2216_s12, %s2216_s12, %s2215_s11  }
  0x44   : > { %s345_s13 = sshll.u32 %s1720_s20, 4  ;;  %s1179_s26 = sshll.u32 %s1865_s25, 3  ;;  %s346_s13 = int_to_ptr.vmem [resolvable:$true] %s345_s13 }
  0x45   : > { %1298 = dma.hbm_to_vmem [thread:$0]  (!%p1835_p10), %s344_s29, 256, %s346_s13, [#allocation12], %s2216_s12, %s2216_s12, %s2215_s11  }
  0x46   : > { %s1249_s1 = sshll.u32 %s1712_s16, 3  ;;  %s366_s9 = scalar_lea.vmem [#allocation2], %s1179_s26 }
  0x47   : > { %s374_s22 = sshll.u32 %s366_s9, 4  ;;  %s371_s10 = scalar_lea.hbm %s2166_s0, %s1249_s1  ;;  %s375_s22 = int_to_ptr.vmem [resolvable:$true] %s374_s22 }
  0x48   : > { %s372_s7 = sshll.u32 %s371_s10, 4  ;;  %s363_s15 = scalar_lea.sflag [#allocation3], %s1865_s25  ;;  %s373_s7 = int_to_ptr.hbm [resolvable:$true] %s372_s7 }
  0x49   : > { %s1514_s20 = sshra.s32 %s373_s7, 4  ;;  %s1521_s26 = scalar_lea.hbm %s2166_s0, 16  ;;  %s1515_s20 = int_to_ptr.hbm [resolvable:$true] %s1514_s20 }
  0x4a   : > { %s1516_s27 = scalar_lea.hbm %s1515_s20, 8  ;;  %p1522_p2 = scmp.lt.s32.totalorder %s1515_s20, %s2166_s0 }
  0x4b   : > { %p1517_p1 = scmp.ne.s32.totalorder %s1515_s20, %s1516_s27  ;;  %p1523_p13 = scmp.lt.s32.totalorder %s1521_s26, %s1516_s27 }
  0x4d   : > { %p1519_p10 = pnand %p1517_p1, %p1428_p12  ;;  %p1524_p0 = por %p1523_p13, %p1522_p2 }
  0x4f   : > { %p1520_p11 = pneg %p1519_p10 }
  0x51   : > { %p1525_p3 = pnand %p1524_p0, %p1520_p11 }
  0x53   : > { %1528 = shalt.err (!%p1525_p3)
}
  0x54   : > { %1302 = dma.hbm_to_vmem [thread:$0]  (!%p1868_p9), %s373_s7, 128, %s375_s22, %s363_s15, %s2216_s12, %s2216_s12, %s2215_s11  }
  0x55   : > { %s1544_s10 = sshra.s32 %s1926_s30, 4  ;;  %s1551_s20 = scalar_lea.hbm %s2168_s2, 32  ;;  %s1545_s10 = int_to_ptr.hbm [resolvable:$true] %s1544_s10 }
  0x56   : > { %s1546_s25 = scalar_lea.hbm %s1545_s10, 16  ;;  %p1552_p11 = scmp.lt.s32.totalorder %s1545_s10, %s2168_s2 }
  0x57   : > { %p1547_p5 = scmp.ne.s32.totalorder %s1545_s10, %s1546_s25  ;;  %p1553_p2 = scmp.lt.s32.totalorder %s1551_s20, %s1546_s25 }
  0x59   : > { %p1549_p1 = pnand %p1547_p5, %p1428_p12  ;;  %p1554_p13 = por %p1553_p2, %p1552_p11 }
  0x5b   : > { %p1550_p10 = pneg %p1549_p1 }
  0x5d   : > { %p1555_p0 = pnand %p1554_p13, %p1550_p10 }
  0x5f   : > { %1558 = shalt.err (!%p1555_p0)
}
  0x60   : > { %s2217_s11 = smov 8   ;;  %s2218_s12 = smov 128  }
  0x61   : > { %1308 = dma.hbm_to_vmem [thread:$0]  (!%p1868_p9), %s1926_s30, 256, %s1903_s3, %s1879_s28, %s2218_s12, %s2218_s12, %s2217_s11  }
  0x62   : > { %430 = sbr.rel (%p1827_p8) target bundleno = 952 (0x3b8), region = 52  ;;  %s1964_s22 = sand.u32 (!%p1827_p8), 1, %s1704_s14  }
  0x63   : > { %s1967_s7 = sshll.u32 (!%p1827_p8), %s1964_s22, 3  ;;  %s433_s23 = scalar_lea.sflag (!%p1827_p8), [#allocation3], %s1964_s22 }
  0x64   : > { %s436_s15 = scalar_lea.vmem (!%p1827_p8), [#allocation2], %s1967_s7 }
  0x67   : > { %1675 = dma.done.wait (%p1814_p4), %s433_s23, 128  }
  0x68   : > { %1677 = vsyncadd (%p1814_p4), %s433_s23, 4294967168  ;;  %s442_s24 = sand.u32 1, %s1803_s17   ;;  %s1190_s28 = sshll.u32 %s1964_s22, 4 }
  0x69   : > { %s443_s3 = scalar_lea.sflag [#allocation6], %s442_s24  ;;  %s1979_s30 = scalar_lea.vmem [#allocation5], %s1190_s28 }
  0x6a   : > { %1679 = dma.done.wait (%p1814_p4), %s443_s3, 512  }
  0x6b   : > { %1681 = vsyncadd (%p1814_p4), %s443_s3, 4294966784  ;;  %s1985_s13 = scalar_lea.vmem [#allocation7], %s1190_s28  ;;  %p2219_p8 = scmp.eq.s32.totalorder %s1803_s17, 0 }
  0x6d   : > { %1683 = dma.done.wait (%p2219_p8), [#allocation9], 768   ;;  %p2220_p9 = pmov %p2219_p8 }
  0x6e   : > { %p2221_p12 = pmov %p2219_p8 }
  0x6f   : > { %1685 = vsyncadd (%p2220_p9), [#allocation9], 4294966528 }
  0x70   : > { %1687 = dma.done.wait (%p2221_p12), [#allocation12], 256   ;;  %p2222_p3 = pmov %p2219_p8 }
  0x71   : > { %v1256_v0 = vld [vmem:[#allocation8 + $0x18] sm:$0xff]  ;;  %v1255_v1 = vld [vmem:[#allocation8 + $0x10] sm:$0xff]  ;;  %v1254_v2 = vld [vmem:[#allocation8 + $0x8] sm:$0xff]  ;;  %vm579_vm0 = vcmask 523264   ;;  %s1721_s9 = smov 32   ;;  %s1722_s1 = smov 64  }
  0x72   : > { %1689 = vsyncadd (%p2222_p3), [#allocation12], 4294967040  ;;  %587 = vmatpush.bf16.msra.mxu0 %v1256_v0  ;;  %v1253_v3 = vld [vmem:[#allocation8] sm:$0xff]  ;;  %v1252_v4 = vld [vmem:[%s436_s15] sm:$0xff]  ;;  %s1195_s10 = sshll.u32 %s1964_s22, 5  ;;  %vm693_vm1 = vcmask 261120  }
  0x73   : > { %v1372_v5 = vld [vmem:[%s2170_s4] ss:$0 sm:$0xff]  ;;  %v600_v19 = vld [vmem:[%s1985_s13 + $0x8] sm:$0xff]  ;;  %s2016_s25 = scalar_lea.vmem [#allocation13], %s1195_s10  ;;  %v1257_v29 = vld [vmem:[#allocation10] sm:$0xff]  ;;  %vm735_vm2 = vcmask 523520  }
  0x74   : > { %v599_v16 = vld [vmem:[%s1985_s13] sm:$0xff]  ;;  %v2009_v22 = vld [vmem:[%s1979_s30 + $0x8] sm:$0xff]  ;;  %s1723_s18 = smov 96   ;;  %v658_v38 = vmul.f32 %v600_v19, %v600_v19  ;;  %vm746_vm13 = vcmask 785920   ;;  %vm757_vm14 = vcmask 1048320   ;;  %s1262_s21 = sshll.u32 %s1803_s17, 5 }
  0x75   : > { %v657_v23 = vmul.f32 %v599_v16, %v599_v16  ;;  %v1258_v27 = vld [vmem:[#allocation10 + $0x8] sm:$0xff]  ;;  %v597_v40 = vld [vmem:[%s1979_s30] sm:$0xff]  ;;  %v1260_v55 = vld [vmem:[#allocation11 + $0x8] sm:$0xff]  ;;  %s927_s11 = scalar_lea.hbm %s2174_s8, %s1262_s21  ;;  %s928_s12 = sshll.u32 %s2016_s25, 4  ;;  %s929_s12 = int_to_ptr.vmem [resolvable:$true] %s928_s12 }
  0x76   : > { %588 = vmatpush.bf16.msra.mxu0 %v1255_v1  ;;  %703 = vmatpush.bf16.msra.mxu1 %v1258_v27  ;;  %v639_v43 = vmul.f32 %v597_v40, %v597_v40  ;;  %v1259_v56 = vld [vmem:[#allocation11] sm:$0xff]  ;;  %s930_s23 = sshll.u32 %s927_s11, 4  ;;  %s905_s28 = scalar_lea.sflag [#allocation4], %s1964_s22  ;;  %s931_s23 = int_to_ptr.hbm [resolvable:$true] %s930_s23 }
  0x77   : > { %841 = vmatpush.bf16.msra.mxu2 %v1260_v55  ;;  %s1588_s3 = sshra.s32 %s931_s23, 4  ;;  %s1594_s26 = scalar_lea.hbm %s2174_s8, 64  ;;  %s1589_s3 = int_to_ptr.hbm [resolvable:$true] %s1588_s3 }
  0x78   : > { %s1590_s30 = scalar_lea.hbm %s1589_s3, 32  ;;  %p1595_p10 = scmp.lt.s32.totalorder %s1589_s3, %s2174_s8 }
  0x79   : > { %p1591_p4 = scmp.ne.s32.totalorder %s1589_s3, %s1590_s30  ;;  %p1596_p11 = scmp.lt.s32.totalorder %s1594_s26, %s1590_s30 }
  0x7a   : > { %589 = vmatpush.bf16.msra.mxu0 %v1254_v2  ;;  %704 = vmatpush.bf16.msra.mxu1 %v1257_v29  ;;  %v772_v2 = vlaneseq }
  0x7b   : > { %842 = vmatpush.bf16.msra.mxu2 %v1259_v56  ;;  %p1592_p5 = pnand %p1591_p4, %p1860_p7  ;;  %p1597_p2 = por %p1596_p11, %p1595_p10 }
  0x7d   : > { %p1593_p1 = pneg %p1592_p5 }
  0x7e   : > { %590 = vmatpush.bf16.msra.mxu0 %v1253_v3 }
  0x7f   : > { %p1598_p13 = pnand %p1597_p2, %p1593_p1 }
  0x81   : > { %1218 = vmatmul.msk.bf16.vlgmr.msra.gmra.mxu0 %vm579_vm0, %v1252_v4 }
  0xfe   : > { %v592_v6 = vpop.f32.mrf.mxu0 }
  0xff   : > { %v593_v7 = vadd.f32 %v1372_v5, %v592_v6 }
 0x101   : > { %v601_v8 = vmul.f32 0.5, %v593_v7 }
 0x103   : > { %v603_v9 = vmul.f32 1.442695, %v601_v8  ;;  %v773_v8 = vshrl.u32 %v772_v2, 7 }
 0x105   : > { %1374 = vpow2.f32 %v603_v9  ;;  %v640_v9 = vmul.f32 %v2009_v22, %v2009_v22  ;;  %vm774_vm9 = vcmp.lt.s32.totalorder %v773_v8, 1  ;;  %vm779_vm10 = vcmp.lt.s32.totalorder %v773_v8, 5 }
 0x106   : > { %v594_v10 = vpop.f32.mrf.mxu0 }
 0x107   : > { %v595_v11 = vadd.f32 %v1372_v5, %v594_v10 }
 0x109   : > { %v602_v12 = vmul.f32 0.5, %v595_v11 }
 0x10b   : > { %v1375_v13 = vpop.eup %1374  ;;  %v605_v14 = vmul.f32 1.442695, %v602_v12 }
 0x10c   : > { %619 = vrot.lane.b32.xlu0 %v1375_v13, %s1721_s9 }
 0x10d   : > { %1376 = vpow2.f32 %v605_v14 }
 0x113   : > { %v1377_v15 = vpop.eup %1376 }
 0x114   : > { %621 = vrot.lane.b32.xlu0 %v1377_v15, %s1721_s9 }
 0x11c   : > { %611 = vrot.lane.b32.xlu0 %v1377_v15, %s1722_s1  ;;  %v782_v15 = vadd.s32 8, %v773_v8 }
 0x124   : > { %645 = vrot.lane.b32.xlu0 %v593_v7, %s1722_s1 }
 0x17e   : > { %v620_v17 = vpop.permute.xlu0 %619 }
 0x17f   : > { %v625_v18 = vmul.f32 %v620_v17, %v599_v16 }
 0x181   : > { %629 = vrot.lane.b32.xlu1 %v625_v18, %s1721_s9 }
 0x186   : > { %v622_v20 = vpop.permute.xlu0 %621 }
 0x187   : > { %v626_v21 = vmul.f32 %v622_v20, %v600_v19  ;;  %v787_v20 = vand.u32 3, %v773_v8 }
 0x189   : > { %631 = vrot.lane.b32.xlu1 %v626_v21, %s1721_s9  ;;  %v794_v21 = vand.u32 3, %v782_v15  ;;  %vm807_vm11 = vcmp.ge.s32.totalorder %v787_v20, 1 }
 0x18b   : > { %vm808_vm12 = vcmp.ge.s32.totalorder %v794_v21, 1 }
 0x18e   : > { %v612_v24 = vpop.permute.xlu0 %611 }
 0x18f   : > { %v616_v25 = vmul.f32 %v612_v24, %v2009_v22 }
 0x191   : > { %v2013_v26 = vadd.f32 %v616_v25, %v595_v11  ;;  %661 = vrot.lane.b32.xlu1 %v657_v23, %s1721_s9 }
 0x193   : > { %734 = vst.msk [vmem:[%s2016_s25 + $0x10] sm:$0xff] %vm693_vm1, %v2013_v26  ;;  %v638_v10 = vmul.f32 %v2013_v26, %v2013_v26 }
 0x195   : > { %v642_v16 = vsub.f32 %v638_v10, %v640_v9 }
 0x196   : > { %v2040_v47 = vpop.permute.xlu0 %645 }
 0x199   : > { %647 = vrot.lane.b32.xlu1 %v595_v11, %s1722_s1 }
 0x1f3   : > { %v630_v28 = vpop.permute.xlu1 %629 }
 0x1f4   : > { %v635_v30 = vadd.f32 %v630_v28, %v593_v7 }
 0x1f6   : > { %v2022_v33 = vmul.f32 %v635_v30, %v635_v30 }
 0x1fb   : > { %v632_v31 = vpop.permute.xlu1 %631 }
 0x1fc   : > { %v636_v32 = vadd.f32 %v632_v31, %v595_v11 }
 0x1fe   : > { %v656_v34 = vmul.f32 %v636_v32, %v636_v32  ;;  %737 = vst.msk [vmem:[%s2016_s25 + $0x10] sm:$0xff] %vm735_vm2, %v636_v32 }
 0x200   : > { %v673_v35 = vpack.c.bf16 %v656_v34, %v2022_v33 }
 0x202   : > { %679 = vrot.lane.b32.xlu2 %v673_v35, %s1723_s18 }
 0x203   : > { %v2028_v36 = vpop.permute.xlu1 %661 }
 0x204   : > { %v667_v37 = vsub.f32 %v2022_v33, %v2028_v36 }
 0x20a   : > { %609 = vrot.lane.b32.xlu2 %v1375_v13, %s1722_s1 }
 0x20b   : > { %v648_v52 = vpop.permute.xlu1 %647 }
 0x20c   : > { %v652_v18 = vsub.f32 %v642_v16, %v648_v52 }
 0x20e   : > { %v654_v23 = vmul.f32 0.5, %v652_v18 }
 0x212   : > { %663 = vrot.lane.b32.xlu2 %v658_v38, %s1721_s9 }
 0x25c   : > { %v680_v39 = vpop.permute.xlu2 %679 }
 0x25d   : > { %1227 = vmatmul.msk.bf16.vlgmr.msra.gmra.mxu1 %vm693_vm1, %v680_v39 }
 0x264   : > { %v610_v41 = vpop.permute.xlu2 %609 }
 0x265   : > { %v615_v42 = vmul.f32 %v610_v41, %v597_v40 }
 0x267   : > { %v617_v44 = vadd.f32 %v615_v42, %v593_v7 }
 0x269   : > { %v637_v45 = vmul.f32 %v617_v44, %v617_v44  ;;  %733 = vst.msk [vmem:[%s2016_s25] sm:$0xff] %vm693_vm1, %v617_v44 }
 0x26a   : > { %736 = vst.msk [vmem:[%s2016_s25] sm:$0xff] %vm735_vm2, %v635_v30  ;;  %v669_v30 = vsub.f32 %v667_v37, %v2040_v47 }
 0x26b   : > { %v641_v46 = vsub.f32 %v637_v45, %v639_v43 }
 0x26c   : > { %v664_v48 = vpop.permute.xlu2 %663  ;;  %v671_v40 = vmul.f32 0.5, %v669_v30 }
 0x26d   : > { %v651_v49 = vsub.f32 %v641_v46, %v2040_v47  ;;  %v668_v50 = vsub.f32 %v656_v34, %v664_v48 }
 0x26f   : > { %v653_v51 = vmul.f32 0.5, %v651_v49  ;;  %v670_v53 = vsub.f32 %v668_v50, %v648_v52 }
 0x271   : > { %751 = vrot.lane.b32.xlu1 %v653_v51, %s1723_s18  ;;  %v672_v54 = vmul.f32 0.5, %v670_v53 }
 0x279   : > { %764 = vrot.lane.b32.xlu1 %v672_v54, %s1723_s18 }
 0x2da   : > { %v706_v57 = vpop.f32.mrf.mxu1 }
 0x2db   : > { %v707_v58 = vadd.f32 1e-06, %v706_v57 }
 0x2dd   : > { %1378 = vrsqrt.f32 %v707_v58  ;;  %vm717_vm4 = vweird.f32 %v707_v58 }
 0x2e2   : > { %v708_v59 = vpop.f32.mrf.mxu1 }
 0x2e3   : > { %v1379_v60 = vpop.eup %1378  ;;  %v709_v61 = vadd.f32 1e-06, %v708_v59  ;;  %v752_v62 = vpop.permute.xlu1 %751 }
 0x2e4   : > { %v712_v63 = vmul.f32 %v1379_v60, %v707_v58  ;;  %vm718_vm3 = vweird.f32 %v1379_v60 }
 0x2e5   : > { %1380 = vrsqrt.f32 %v709_v61  ;;  %vm719_vm5 = vmor %vm717_vm4, %vm718_vm3  ;;  %vm727_vm7 = vweird.f32 %v709_v61 }
 0x2e6   : > { %v713_v0 = vmul.f32 %v1379_v60, %v712_v63 }
 0x2e8   : > { %v714_v1 = vmul.f32 0.5, %v713_v0 }
 0x2ea   : > { %v715_v3 = vsub.f32 1.5, %v714_v1 }
 0x2eb   : > { %v1381_v4 = vpop.eup %1380  ;;  %v765_v5 = vpop.permute.xlu1 %764 }
 0x2ec   : > { %v722_v6 = vmul.f32 %v1381_v4, %v709_v61  ;;  %769 = vst.msk [vmem:[%s2016_s25 + $0x18] sm:$0xff] %vm693_vm1, %v765_v5  ;;  %v716_v7 = vmul.f32 %v1379_v60, %v715_v3  ;;  %vm728_vm6 = vweird.f32 %v1381_v4 }
 0x2ed   : > { %vm729_vm8 = vmor %vm727_vm7, %vm728_vm6 }
 0x2ee   : > { %v723_v11 = vmul.f32 %v1381_v4, %v722_v6  ;;  %v720_v12 = vsel %vm719_vm5, %v1379_v60, %v716_v7 }
 0x2ef   : > { %v731_v13 = vmul.f32 %v720_v12, %v617_v44 }
 0x2f0   : > { %v724_v14 = vmul.f32 0.5, %v723_v11 }
 0x2f1   : > { %740 = vrot.lane.b32.xlu2 %v731_v13, %s1722_s1  ;;  %v770_v25 = vrot.slane %v731_v13, 7  ;;  %v777_v27 = vrot.slane %v731_v13, 3 }
 0x2f2   : > { %v725_v17 = vsub.f32 1.5, %v724_v14 }
 0x2f4   : > { %v726_v19 = vmul.f32 %v1381_v4, %v725_v17 }
 0x2f6   : > { %v730_v22 = vsel %vm729_vm8, %v1381_v4, %v726_v19 }
 0x2f7   : > { %v732_v24 = vmul.f32 %v730_v22, %v2013_v26 }
 0x2f9   : > { %742 = vrot.lane.b32.xlu0 %v732_v24, %s1722_s1  ;;  %v771_v28 = vrot.slane %v732_v24, 7  ;;  %v778_v29 = vrot.slane %v732_v24, 3  ;;  %753 = vrot.lane.b32.xlu2 %v654_v23, %s1723_s18 }
 0x2fb   : > { %v775_v26 = vsel %vm774_vm9, %v770_v25, %v771_v28  ;;  %v776_v31 = vsel %vm774_vm9, %v771_v28, %v770_v25  ;;  %v780_v32 = vsel %vm779_vm10, %v777_v27, %v778_v29  ;;  %v781_v34 = vsel %vm779_vm10, %v778_v29, %v777_v27 }
 0x2fc   : > { %v809_v35 = vsel %vm807_vm11, %v776_v31, %v780_v32  ;;  %v810_v38 = vsel %vm808_vm12, %v775_v26, %v781_v34 }
 0x2fd   : > { %v811_v39 = vpack.c.bf16 %v810_v38, %v809_v35 }
 0x2ff   : > { %1236 = vmatmul.msk.bf16.vlgmr.msra.gmra.mxu2 %vm693_vm1, %v811_v39 }
 0x301   : > { %762 = vrot.lane.b32.xlu0 %v671_v40, %s1723_s18 }
 0x34b   : > { %v741_v33 = vpop.permute.xlu2 %740 }
 0x34c   : > { %747 = vst.msk [vmem:[%s2016_s25] sm:$0xff] %vm746_vm13, %v741_v33 }
 0x34d   : > { %758 = vst.msk [vmem:[%s2016_s25] sm:$0xff] %vm757_vm14, %v752_v62 }
 0x353   : > { %v754_v37 = vpop.permute.xlu2 %753 }
 0x36b   : > { %v743_v36 = vpop.permute.xlu0 %742 }
 0x36c   : > { %748 = vst.msk [vmem:[%s2016_s25 + $0x10] sm:$0xff] %vm746_vm13, %v743_v36 }
 0x36d   : > { %759 = vst.msk [vmem:[%s2016_s25 + $0x10] sm:$0xff] %vm757_vm14, %v754_v37 }
 0x373   : > { %v763_v41 = vpop.permute.xlu0 %762 }
 0x374   : > { %768 = vst.msk [vmem:[%s2016_s25 + $0x8] sm:$0xff] %vm693_vm1, %v763_v41 }
 0x375   : > { %1601 = shalt.err (!%p1598_p13)
}
 0x376   : > { %s1724_s22 = smov 256   ;;  %s1725_s25 = smov 16   ;;  %v536_v54 = vld [vmem:[%s436_s15] sm:$0xff]   ;;  %vm897_vm0 = vcmask 519168  }
 0x377   : > { %1283 = dma.vmem_to_hbm [thread:$0]  (%p1860_p7), %s929_s12, 512, %s931_s23, %s905_s28, %s1724_s22, %s1724_s22, %s1725_s25   ;;  %v867_v57 = vunpack.c.l.bf16 %v536_v54  ;;  %v868_v3 = vunpack.c.h.bf16 %v536_v54 }
 0x378   : > { %s2224_s20 = sld [smem:[#allocation31_spill]]  ;;  %s1263_s15 = sshll.u32 %s1803_s17, 3 }
 0x379   : > { %s521_s27 = scalar_lea.vmem [#allocation14], %s1967_s7  ;;  %s2225_s23 = sld [smem:[#allocation32_spill]] }
 0x37a   : > { %s945_s3 = sshll.u32 %s521_s27, 4  ;;  %s2226_s19 = sld [smem:[#allocation33_spill]]  ;;  %s2102_s3 = int_to_ptr.vmem [resolvable:$true] %s945_s3 }
 0x37b   : > { %s2098_s10 = scalar_lea.vmem [#allocation16], %s1967_s7  ;;  %s2112_s7 = scalar_lea.sflag [#allocation15], %s442_s24 }
 0x37c   : > { %s962_s25 = sshll.u32 %s2098_s10, 4  ;;  %s2108_s25 = int_to_ptr.vmem [resolvable:$true] %s962_s25 }
 0x37e   : > { %v1373_v42 = vld [vmem:[%s2224_s20] ss:$0 sm:$0xff] }
 0x37f   : > { %s944_s28 = scalar_lea.hbm %s2225_s23, %s1263_s15  ;;  %s1622_s11 = scalar_lea.hbm %s2225_s23, 16 }
 0x380   : > { %s961_s26 = scalar_lea.hbm %s2226_s19, %s1263_s15  ;;  %s947_s9 = sshll.u32 %s944_s28, 4  ;;  %s948_s9 = int_to_ptr.hbm [resolvable:$true] %s947_s9 }
 0x381   : > { %s964_s22 = sshll.u32 %s961_s26, 4  ;;  %s1616_s18 = sshra.s32 %s948_s9, 4  ;;  %s2106_s22 = int_to_ptr.hbm [resolvable:$true] %s964_s22  ;;  %s1617_s18 = int_to_ptr.hbm [resolvable:$true] %s1616_s18 }
 0x382   : > { %v844_v43 = vpop.f32.mrf.mxu2  ;;  %s1618_s21 = scalar_lea.hbm %s1617_s18, 8  ;;  %p1623_p12 = scmp.lt.s32.totalorder %s1617_s18, %s2225_s23 }
 0x383   : > { %v845_v44 = vadd.f32 %v1373_v42, %v844_v43  ;;  %p1619_p0 = scmp.ne.s32.totalorder %s1617_s18, %s1618_s21  ;;  %p1624_p3 = scmp.lt.s32.totalorder %s1622_s11, %s1618_s21 }
 0x385   : > { %v849_v45 = vand.u32 2147483647, %v845_v44  ;;  %v869_v60 = vmax.f32 %v845_v44, 0.0  ;;  %v871_v61 = vmul.f32 %v867_v57, %v845_v44  ;;  %vm861_vm15 = vcmp.ge.f32.partialorder %v845_v44, 0.0  ;;  %p1620_p8 = pnand %p1619_p0, %p1860_p7  ;;  %p1625_p4 = por %p1624_p3, %p1623_p12 }
 0x387   : > { %v851_v46 = vsub.f32 0.0, %v849_v45  ;;  %v873_v8 = vsub.f32 %v869_v60, %v871_v61  ;;  %p1621_p9 = pneg %p1620_p8 }
 0x389   : > { %v853_v47 = vmul.f32 1.442695, %v851_v46  ;;  %p1626_p5 = pnand %p1625_p4, %p1621_p9 }
 0x38a   : > { %v846_v48 = vpop.f32.mrf.mxu2 }
 0x38b   : > { %1382 = vpow2.f32 %v853_v47  ;;  %v847_v49 = vadd.f32 %v1373_v42, %v846_v48 }
 0x38d   : > { %v850_v50 = vand.u32 2147483647, %v847_v49  ;;  %v870_v14 = vmax.f32 %v847_v49, 0.0  ;;  %v872_v15 = vmul.f32 %v868_v3, %v847_v49  ;;  %vm862_vm2 = vcmp.ge.f32.partialorder %v847_v49, 0.0 }
 0x38f   : > { %v852_v51 = vsub.f32 0.0, %v850_v50  ;;  %v874_v23 = vsub.f32 %v870_v14, %v872_v15 }
 0x391   : > { %v1383_v52 = vpop.eup %1382  ;;  %v855_v53 = vmul.f32 1.442695, %v852_v51 }
 0x392   : > { %v857_v55 = vadd.f32 1.0, %v1383_v52  ;;  %v878_v56 = vmul.f32 -0.5, %v1383_v52  ;;  %v881_v62 = vand.u32 2147483647, %v1383_v52 }
 0x393   : > { %1384 = vpow2.f32 %v855_v53 }
 0x394   : > { %1386 = vrcp.f32 %v857_v55  ;;  %v879_v58 = vadd.f32 1.0, %v878_v56  ;;  %vm882_vm1 = vcmp.lt.f32.partialorder %v881_v62, 0.0004427343 }
 0x395   : > { %1388 = vlog2.f32 %v857_v55 }
 0x396   : > { %v880_v5 = vmul.f32 %v1383_v52, %v879_v58 }
 0x399   : > { %v1385_v59 = vpop.eup %1384 }
 0x39a   : > { %v1387_v63 = vpop.eup %1386  ;;  %v858_v0 = vadd.f32 1.0, %v1385_v59  ;;  %v887_v6 = vmul.f32 -0.5, %v1385_v59  ;;  %v890_v16 = vand.u32 2147483647, %v1385_v59 }
 0x39b   : > { %v1389_v1 = vpop.eup %1388  ;;  %v863_v2 = vmul.f32 %v1387_v63, %v1383_v52 }
 0x39c   : > { %v877_v4 = vmul.f32 0.6931472, %v1389_v1  ;;  %1390 = vrcp.f32 %v858_v0  ;;  %v888_v12 = vadd.f32 1.0, %v887_v6  ;;  %vm891_vm3 = vcmp.lt.f32.partialorder %v890_v16, 0.0004427343 }
 0x39d   : > { %v865_v7 = vsel %vm861_vm15, %v1387_v63, %v863_v2  ;;  %1392 = vlog2.f32 %v858_v0 }
 0x39e   : > { %v883_v9 = vsel %vm882_vm1, %v880_v5, %v877_v4  ;;  %v895_v10 = vpack.c.bf16 %v865_v7, %v865_v7  ;;  %v889_v21 = vmul.f32 %v1385_v59, %v888_v12 }
 0x39f   : > { %v893_v11 = vadd.f32 %v883_v9, %v873_v8 }
 0x3a0   : > { %898 = vst.msk [vmem:[%s521_s27] sm:$0xf] %vm897_vm0, %v895_v10 }
 0x3a1   : > { %v900_v13 = vpack.c.bf16 %v893_v11, %v893_v11 }
 0x3a2   : > { %v1391_v17 = vpop.eup %1390 }
 0x3a3   : > { %v1393_v18 = vpop.eup %1392  ;;  %v864_v19 = vmul.f32 %v1391_v17, %v1385_v59  ;;  %902 = vst.msk [vmem:[%s2098_s10] sm:$0xf] %vm897_vm0, %v900_v13 }
 0x3a4   : > { %v886_v20 = vmul.f32 0.6931472, %v1393_v18 }
 0x3a5   : > { %v866_v22 = vsel %vm862_vm2, %v1391_v17, %v864_v19 }
 0x3a6   : > { %v892_v24 = vsel %vm891_vm3, %v889_v21, %v886_v20  ;;  %v896_v25 = vpack.c.bf16 %v866_v22, %v866_v22 }
 0x3a7   : > { %v894_v27 = vadd.f32 %v892_v24, %v874_v23 }
 0x3a8   : > { %899 = vst.msk [vmem:[%s521_s27 + $0x4] sm:$0xf] %vm897_vm0, %v896_v25 }
 0x3a9   : > { %v901_v28 = vpack.c.bf16 %v894_v27, %v894_v27 }
 0x3aa   : > { %1629 = shalt.err (!%p1626_p5)
}
 0x3ab   : > { %s1726_s17 = smov 4   ;;  %903 = vst.msk [vmem:[%s2098_s10 + $0x4] sm:$0xf] %vm897_vm0, %v901_v28  ;;  %s1644_s24 = sshra.s32 %s2106_s22, 4  ;;  %s1645_s24 = int_to_ptr.hbm [resolvable:$true] %s1644_s24 }
 0x3ac   : > { %1284 = dma.vmem_to_hbm [thread:$0]  (%p1860_p7), %s2102_s3, 128, %s948_s9, %s2112_s7, %s1722_s1, %s1722_s1, %s1726_s17  }
 0x3ad   : > { %s1646_s28 = scalar_lea.hbm %s1645_s24, 8  ;;  %s1650_s26 = scalar_lea.hbm %s2226_s19, 16 }
 0x3ae   : > { %p1647_p1 = scmp.ne.s32.totalorder %s1645_s24, %s1646_s28  ;;  %p1651_p2 = scmp.lt.s32.totalorder %s1645_s24, %s2226_s19 }
 0x3af   : > { %p1652_p13 = scmp.lt.s32.totalorder %s1650_s26, %s1646_s28 }
 0x3b0   : > { %p1648_p10 = pnand %p1647_p1, %p1860_p7 }
 0x3b1   : > { %p1653_p0 = por %p1652_p13, %p1651_p2 }
 0x3b2   : > { %p1649_p11 = pneg %p1648_p10 }
 0x3b4   : > { %p1654_p8 = pnand %p1653_p0, %p1649_p11 }
 0x3b6   : > { %1657 = shalt.err (!%p1654_p8)
}
 0x3b7   : > { %1285 = dma.vmem_to_hbm [thread:$0]  (%p1860_p7), %s2108_s25, 128, %s2106_s22, %s2112_s7, %s1722_s1, %s1722_s1, %s1726_s17  }
 0x3b8 PF: > { %s2227_s3 = sld [smem:[#allocation23_spill]]  ;;  %p2229_p9 = scmp.ge.s32.totalorder %s1712_s16, 2 }
 0x3ba   : > { %p1310_p12 = pnand %p2229_p9, %p1819_p6 }
 0x3bc   : > { %p1311_p3 = pneg %p1310_p12 }
 0x3be   : > { %s979_s10 = sand.u32 1, %s2227_s3  }
 0x3bf   : > { %s980_s20 = scalar_lea.sflag [#allocation4], %s979_s10 }
 0x3c0   : > { %1691 = dma.done.wait (%p1311_p3), %s980_s20, 512  }
 0x3c1   : > { %1693 = vsyncadd (%p1311_p3), %s980_s20, 4294966784  ;;  %s2230_s29 = sadd.s32 4294967294, %s1712_s16  }
 0x3c2   : > { %s989_s15 = sand.u32 1, %s2230_s29  }
 0x3c3   : > { %s990_s11 = scalar_lea.sflag [#allocation15], %s989_s15 }
 0x3c4   : > { %1695 = dma.done.wait (%p1311_p3), %s990_s11, 256  }
 0x3c5   : > { %1697 = vsyncadd (%p1311_p3), %s990_s11, 4294967040  ;;  %s2231_s16 = sld [smem:[#allocation26_spill]]  ;;  %s2234_s13 = smov %s1704_s14 }
 0x3c6   : > { %s2232_s1 = sld [smem:[#allocation24_spill]] }
 0x3c7   : > { %s2233_s15 = sld [smem:[#allocation27_spill]] }
 0x3cb   : > { %p32_p7 = scmp.ge.s32.totalorder %s2231_s16, 4  }
 0x3cc   : > { %s2235_s14 = smov %s2232_s1 }
 0x3cd   :  { %34 = sbr.rel (!%p32_p7) target bundleno = 17 (0x11), region = 165 }
 0x3d2   :  { %1006 = vsyncpa [#allocation3], 1 }
 0x3d3   :  { %1008 = vsyncpa [#allocation3 + $0x1], 1 }
 0x3d4   :  { %1009 = vsyncpa [#allocation6], 1 }
 0x3d5   :  { %1011 = vsyncpa [#allocation6 + $0x1], 1 }
 0x3d6   :  { %1012 = vsyncpa [#allocation9], 1 }
 0x3d7   :  { %1013 = vsyncpa [#allocation12], 1 }
 0x3d8   :  { %1014 = vsyncpa [#allocation4], 1 }
 0x3d9   :  { %1016 = vsyncpa [#allocation4 + $0x1], 1 }
 0x3da   :  { %1017 = vsyncpa [#allocation15], 1 }
 0x3db   :  { %1019 = vsyncpa [#allocation15 + $0x1], 1 }

</bundles_post_ra>
